<compile_context>
chip_gen: v7x
topology: tpu7x:2x2x1
jax: 0.10.0
libtpu: 0.0.40
codegen_flags: <defaults>
</compile_context>

<pallas_src>
import math
import functools

import jax
import jax.numpy as jnp
from jax.experimental import pallas as pl
from jax.experimental.pallas import tpu as pltpu

EMBED = 128
N_HEADS = 8
FF = EMBED * 4
EPS = 1e-5  # nn.LayerNorm default


def _layernorm(v, gamma, beta):
    mu = jnp.mean(v, axis=-1, keepdims=True)
    var = jnp.mean((v - mu) ** 2, axis=-1, keepdims=True)
    return (v - mu) * jax.lax.rsqrt(var + EPS) * gamma + beta


def encoder_layer_kernel(
    x_ref,                    # (rows, D)            f32
    ln1_g_ref, ln1_b_ref,     # (1, D)               f32
    w_qkv_ref, b_qkv_ref,     # (D, 3D) bf16, (1,3D) f32
    w_out_ref, b_out_ref,     # (D, D)  bf16, (1,D)  f32
    ln2_g_ref, ln2_b_ref,     # (1, D)               f32
    w1_ref, b1_ref,           # (D, FF) bf16, (1,FF) f32
    w2_ref, b2_ref,           # (FF, D) bf16, (1,D)  f32
    o_ref,                    # (rows, D)
    *, n_heads, seq_len,
):
    M, D = x_ref.shape
    bblk = M // seq_len
    dh = D // n_heads
    scale = 1.0 / math.sqrt(dh)

    x = x_ref[...].astype(jnp.float32)

    # ---- sublayer 1: x + MHA(LN1(x)) --------------------------------------
    x2 = _layernorm(x, ln1_g_ref[...], ln1_b_ref[...])
    qkv = jnp.dot(x2.astype(jnp.bfloat16), w_qkv_ref[...],
                  preferred_element_type=jnp.float32) + b_qkv_ref[...]  # (M, 3D) f32

    # Cast once (not per head); fold 1/sqrt(dh) into q before the cast.
    q = (qkv[:, :D] * scale).astype(jnp.bfloat16)
    k = qkv[:, D:2 * D].astype(jnp.bfloat16)
    v = qkv[:, 2 * D:].astype(jnp.bfloat16)

    # TODO(synk): static unroll leaves per-head (bblk,S,S) score/prob live
    # ranges to the compiler; switch to lax.fori_loop + a VMEM ctx scratch
    # (and a head-batched dot_general) before scaling S or targeting v7x's
    # 64 MiB VMEM.  Kept as a static per-head loop with 3-D einsums for
    # robust Mosaic lowering.
    ctx_heads = []
    for h in range(n_heads):
        lo = h * dh
        qh = q[:, lo:lo + dh].reshape(bblk, seq_len, dh)
        kh = k[:, lo:lo + dh].reshape(bblk, seq_len, dh)
        vh = v[:, lo:lo + dh].reshape(bblk, seq_len, dh)
        s = jnp.einsum("bqd,bkd->bqk", qh, kh,
                       preferred_element_type=jnp.float32)       # (b, S, S)
        s = s - jnp.max(s, axis=-1, keepdims=True)
        p = jnp.exp(s)
        p = p * pl.reciprocal(jnp.sum(p, axis=-1, keepdims=True), approx=True)
        ctx_heads.append(
            jnp.einsum("bqk,bkd->bqd", p.astype(jnp.bfloat16), vh,
                       preferred_element_type=jnp.float32))      # (b, S, dh) f32

    # One K=128 out-projection matmul instead of 8 K=16 matmuls + f32 adds.
    ctx = jnp.concatenate(ctx_heads, axis=-1).reshape(M, D).astype(jnp.bfloat16)
    attn = jnp.dot(ctx, w_out_ref[...], preferred_element_type=jnp.float32)
    x = x + attn + b_out_ref[...]            # residual (dropout = identity)

    # ---- sublayer 2: x + FF(LN2(x)) ----------------------------------------
    x2 = _layernorm(x, ln2_g_ref[...], ln2_b_ref[...])
    h1 = jnp.dot(x2.astype(jnp.bfloat16), w1_ref[...],
                 preferred_element_type=jnp.float32) + b1_ref[...]
    h1 = jnp.maximum(h1, 0.0)                # ReLU (dropout = identity)
    h2 = jnp.dot(h1.astype(jnp.bfloat16), w2_ref[...],
                 preferred_element_type=jnp.float32) + b2_ref[...]
    o_ref[...] = (x + h2).astype(o_ref.dtype)


def encoder_layer(x, params, n_heads=N_HEADS, target_rows=1024):
    """Pre-LN encoder layer.  x: (B, S, D) float32."""
    B, S, D = x.shape
    (ln1_g, ln1_b, w_qkv, b_qkv, w_out, b_out,
     ln2_g, ln2_b, w1, b1, w2, b2) = params
    ff = w1.shape[1]

    # GEMM weights to bf16 once in the wrapper (halves weight DMA / VMEM and
    # removes per-step cast work).  Values match the in-kernel cast exactly.
    w_qkv = w_qkv.astype(jnp.bfloat16)
    w_out = w_out.astype(jnp.bfloat16)
    w1 = w1.astype(jnp.bfloat16)
    w2 = w2.astype(jnp.bfloat16)

    # Rows-per-step must be a multiple of 8 ((8,128) rule).  Pad the batch
    # (padded sequences only attend to themselves, sliced off afterwards)
    # instead of falling back to a single giant block.
    kmin = 8 // math.gcd(S, 8)            # smallest batch chunk with rows % 8 == 0
    B_pad = ((B + kmin - 1) // kmin) * kmin
    if B_pad != B:
        x = jnp.concatenate([x, jnp.zeros((B_pad - B, S, D), x.dtype)], axis=0)

    # Largest slab (multiple of kmin, divisor of B_pad) with <= target_rows
    # rows: bigger slabs amortize per-step overhead and the resident weights.
    row_cap = max(target_rows, kmin * S)
    b_block = kmin
    for cand in range(kmin, B_pad + 1, kmin):
        if B_pad % cand == 0 and cand * S <= row_cap:
            b_block = cand
    rows = b_block * S

    x_flat = x.reshape(B_pad * S, D)       # lane-dense (.., 128) rows
    kernel = functools.partial(encoder_layer_kernel, n_heads=n_heads, seq_len=S)

    full = lambda shape: pl.BlockSpec(shape, lambda i: (0,) * len(shape))
    grid_spec = pltpu.PrefetchScalarGridSpec(
        num_scalar_prefetch=0,
        grid=(B_pad // b_block,),
        in_specs=[
            pl.BlockSpec((rows, D), lambda i: (i, 0)),   # x row slab
            full((1, D)), full((1, D)),                  # ln1
            full((D, 3 * D)), full((1, 3 * D)),          # qkv proj
            full((D, D)), full((1, D)),                  # out proj
            full((1, D)), full((1, D)),                  # ln2
            full((D, ff)), full((1, ff)),                # ff linear1
            full((ff, D)), full((1, D)),                 # ff linear2
        ],
        out_specs=pl.BlockSpec((rows, D), lambda i: (i, 0)),
    )
    # NOTE: weight blocks use constant index_maps so the same VMEM copy is
    # reused across grid steps; pipeline_mode=pl.Buffered(1) would halve
    # their footprint further but is left off for lowering robustness.
    out_flat = pl.pallas_call(
        kernel,
        out_shape=jax.ShapeDtypeStruct((B_pad * S, D), x.dtype),
        grid_spec=grid_spec,
        compiler_params=pltpu.CompilerParams(
            dimension_semantics=("parallel",),
            vmem_limit_bytes=48 * 1024 * 1024),   # > v5e's 16 MiB default, < v7x's 64 MiB physical
    )(x_flat, ln1_g, ln1_b, w_qkv, b_qkv, w_out, b_out,
      ln2_g, ln2_b, w1, b1, w2, b2)
    return out_flat.reshape(B_pad, S, D)[:B]


# ----------------------- pure-JAX reference (for sanity) --------------------
def encoder_layer_ref(x, params, n_heads=N_HEADS):
    (ln1_g, ln1_b, w_qkv, b_qkv, w_out, b_out,
     ln2_g, ln2_b, w1, b1, w2, b2) = params
    B, S, D = x.shape
    dh = D // n_heads

    def ln(v, g, b):
        mu = v.mean(-1, keepdims=True)
        var = ((v - mu) ** 2).mean(-1, keepdims=True)
        return (v - mu) / jnp.sqrt(var + EPS) * g + b

    x2 = ln(x, ln1_g, ln1_b)
    qkv = x2 @ w_qkv + b_qkv
    q, k, v = qkv[..., :D], qkv[..., D:2 * D], qkv[..., 2 * D:]
    split = lambda t: t.reshape(B, S, n_heads, dh).transpose(0, 2, 1, 3)
    q, k, v = split(q), split(k), split(v)
    s = jnp.einsum("bhqd,bhkd->bhqk", q, k) / math.sqrt(dh)
    p = jax.nn.softmax(s, axis=-1)
    o = jnp.einsum("bhqk,bhkd->bhqd", p, v).transpose(0, 2, 1, 3).reshape(B, S, D)
    x = x + (o @ w_out + b_out)
    x2 = ln(x, ln2_g, ln2_b)
    x = x + (jnp.maximum(x2 @ w1 + b1, 0.0) @ w2 + b2)
    return x


def init_params(key, d=EMBED, ff=FF):
    ks = jax.random.split(key, 6)
    scale = 0.02
    ln1_g = jnp.ones((1, d), jnp.float32)
    ln1_b = jnp.zeros((1, d), jnp.float32)
    ln2_g = jnp.ones((1, d), jnp.float32)
    ln2_b = jnp.zeros((1, d), jnp.float32)
    w_qkv = scale * jax.random.normal(ks[0], (d, 3 * d), jnp.float32)
    b_qkv = scale * jax.random.normal(ks[1], (1, 3 * d), jnp.float32)
    w_out = scale * jax.random.normal(ks[2], (d, d), jnp.float32)
    b_out = jnp.zeros((1, d), jnp.float32)
    w1 = scale * jax.random.normal(ks[3], (d, ff), jnp.float32)
    b1 = scale * jax.random.normal(ks[4], (1, ff), jnp.float32)
    w2 = scale * jax.random.normal(ks[5], (ff, d), jnp.float32)
    b2 = jnp.zeros((1, d), jnp.float32)
    return (ln1_g, ln1_b, w_qkv, b_qkv, w_out, b_out,
            ln2_g, ln2_b, w1, b1, w2, b2)


if __name__ == "__main__":
    # TODO(synk): mask handling (masked_fill with -1000.0) not wired; the
    # reference call path uses mask=None.  Dropout is identity (eval mode).
    key = jax.random.PRNGKey(0)
    kx, kp = jax.random.split(key)
    B, S, D = 2, 8, EMBED
    x = jax.random.normal(kx, (B, S, D), jnp.float32)
    params = init_params(kp)

    out = jax.block_until_ready(encoder_layer(x, params))
    ref = encoder_layer_ref(x, params)
    assert out.shape == (B, S, D)
    err = float(jnp.max(jnp.abs(out - ref)))
    # bf16 MXU inputs + approx reciprocal => looser tolerance vs pure-f32 ref.
    assert jnp.allclose(out, ref, rtol=2e-2, atol=2e-2), err
    print("KERNEL_OK")
</pallas_src>

<mosaic_0001>
module attributes {stable_mosaic.version = 11 : i64} {
  func.func @encoder_layer_kernel(%arg0: i32, %arg1: memref<16x128xf32, #tpu.memory_space<vmem>>, %arg2: memref<1x128xf32, #tpu.memory_space<vmem>>, %arg3: memref<1x128xf32, #tpu.memory_space<vmem>>, %arg4: memref<128x384xbf16, #tpu.memory_space<vmem>>, %arg5: memref<1x384xf32, #tpu.memory_space<vmem>>, %arg6: memref<128x128xbf16, #tpu.memory_space<vmem>>, %arg7: memref<1x128xf32, #tpu.memory_space<vmem>>, %arg8: memref<1x128xf32, #tpu.memory_space<vmem>>, %arg9: memref<1x128xf32, #tpu.memory_space<vmem>>, %arg10: memref<128x512xbf16, #tpu.memory_space<vmem>>, %arg11: memref<1x512xf32, #tpu.memory_space<vmem>>, %arg12: memref<512x128xbf16, #tpu.memory_space<vmem>>, %arg13: memref<1x128xf32, #tpu.memory_space<vmem>>, %arg14: memref<16x128xf32, #tpu.memory_space<vmem>>) attributes {dimension_semantics = [#tpu.dimension_semantics<parallel>], iteration_bounds = array<i64: 1>, scalar_prefetch = 0 : i64, scratch_operands = 0 : i64, tpu.core_type = #tpu.core_type<tc>, window_params = [{transform_indices = @transform_0, window_bounds = array<i64: 16, 128>}, {pipeline_mode = #tpu.pipeline_mode<synchronous>, transform_indices = @transform_1, window_bounds = array<i64: 1, 128>}, {pipeline_mode = #tpu.pipeline_mode<synchronous>, transform_indices = @transform_2, window_bounds = array<i64: 1, 128>}, {pipeline_mode = #tpu.pipeline_mode<synchronous>, transform_indices = @transform_3, window_bounds = array<i64: 128, 384>}, {pipeline_mode = #tpu.pipeline_mode<synchronous>, transform_indices = @transform_4, window_bounds = array<i64: 1, 384>}, {pipeline_mode = #tpu.pipeline_mode<synchronous>, transform_indices = @transform_5, window_bounds = array<i64: 128, 128>}, {pipeline_mode = #tpu.pipeline_mode<synchronous>, transform_indices = @transform_6, window_bounds = array<i64: 1, 128>}, {pipeline_mode = #tpu.pipeline_mode<synchronous>, transform_indices = @transform_7, window_bounds = array<i64: 1, 128>}, {pipeline_mode = #tpu.pipeline_mode<synchronous>, transform_indices = @transform_8, window_bounds = array<i64: 1, 128>}, {pipeline_mode = #tpu.pipeline_mode<synchronous>, transform_indices = @transform_9, window_bounds = array<i64: 128, 512>}, {pipeline_mode = #tpu.pipeline_mode<synchronous>, transform_indices = @transform_10, window_bounds = array<i64: 1, 512>}, {pipeline_mode = #tpu.pipeline_mode<synchronous>, transform_indices = @transform_11, window_bounds = array<i64: 512, 128>}, {pipeline_mode = #tpu.pipeline_mode<synchronous>, transform_indices = @transform_12, window_bounds = array<i64: 1, 128>}, {transform_indices = @transform_13, window_bounds = array<i64: 16, 128>}]} {
    %c0 = arith.constant 0 : index
    %c0_0 = arith.constant 0 : index
    %0 = vector.load %arg1[%c0, %c0_0] : memref<16x128xf32, #tpu.memory_space<vmem>>, vector<16x128xf32>
    %c0_1 = arith.constant 0 : index
    %c0_2 = arith.constant 0 : index
    %1 = vector.load %arg2[%c0_1, %c0_2] : memref<1x128xf32, #tpu.memory_space<vmem>>, vector<1x128xf32>
    %c0_3 = arith.constant 0 : index
    %c0_4 = arith.constant 0 : index
    %2 = vector.load %arg3[%c0_3, %c0_4] : memref<1x128xf32, #tpu.memory_space<vmem>>, vector<1x128xf32>
    %cst = arith.constant dense<0.000000e+00> : vector<16xf32>
    %3 = vector.multi_reduction <add>, %0, %cst [1] : vector<16x128xf32> to vector<16xf32>
    %4 = vector.shape_cast %3 : vector<16xf32> to vector<16x1xf32>
    %cst_5 = arith.constant 1.280000e+02 : f32
    %5 = vector.broadcast %cst_5 : f32 to vector<16x1xf32>
    %6 = arith.divf %4, %5 : vector<16x1xf32>
    %7 = vector.broadcast %6 : vector<16x1xf32> to vector<16x128xf32>
    %8 = arith.subf %0, %7 : vector<16x128xf32>
    %9 = arith.mulf %8, %8 : vector<16x128xf32>
    %cst_6 = arith.constant dense<0.000000e+00> : vector<16xf32>
    %10 = vector.multi_reduction <add>, %9, %cst_6 [1] : vector<16x128xf32> to vector<16xf32>
    %11 = vector.shape_cast %10 : vector<16xf32> to vector<16x1xf32>
    %cst_7 = arith.constant 1.280000e+02 : f32
    %12 = vector.broadcast %cst_7 : f32 to vector<16x1xf32>
    %13 = arith.divf %11, %12 : vector<16x1xf32>
    %14 = vector.broadcast %6 : vector<16x1xf32> to vector<16x128xf32>
    %15 = arith.subf %0, %14 : vector<16x128xf32>
    %cst_8 = arith.constant 9.99999974E-6 : f32
    %16 = vector.broadcast %cst_8 : f32 to vector<16x1xf32>
    %17 = arith.addf %13, %16 : vector<16x1xf32>
    %18 = math.rsqrt %17 : vector<16x1xf32>
    %19 = vector.broadcast %18 : vector<16x1xf32> to vector<16x128xf32>
    %20 = arith.mulf %15, %19 : vector<16x128xf32>
    %21 = vector.broadcast %1 : vector<1x128xf32> to vector<16x128xf32>
    %22 = arith.mulf %20, %21 : vector<16x128xf32>
    %23 = vector.broadcast %2 : vector<1x128xf32> to vector<16x128xf32>
    %24 = arith.addf %22, %23 : vector<16x128xf32>
    %25 = arith.truncf %24 : vector<16x128xf32> to vector<16x128xbf16>
    %c0_9 = arith.constant 0 : index
    %c0_10 = arith.constant 0 : index
    %26 = vector.load %arg4[%c0_9, %c0_10] : memref<128x384xbf16, #tpu.memory_space<vmem>>, vector<128x384xbf16>
    %cst_11 = arith.constant dense<0.000000e+00> : vector<16x384xf32>
    %27 = tpu.matmul %25, %26, %cst_11 {dimension_numbers = #tpu.dot_dimension_numbers<[1], [0], [0], [1], [0, 0, 1, 1], [], []>} : vector<16x128xbf16>, vector<128x384xbf16>, vector<16x384xf32> -> vector<16x384xf32>
    %c0_12 = arith.constant 0 : index
    %c0_13 = arith.constant 0 : index
    %28 = vector.load %arg5[%c0_12, %c0_13] : memref<1x384xf32, #tpu.memory_space<vmem>>, vector<1x384xf32>
    %29 = vector.broadcast %28 : vector<1x384xf32> to vector<16x384xf32>
    %30 = arith.addf %27, %29 : vector<16x384xf32>
    %31 = vector.extract_strided_slice %30 {offsets = [0, 0], sizes = [16, 128], strides = [1, 1]} : vector<16x384xf32> to vector<16x128xf32>
    %cst_14 = arith.constant 2.500000e-01 : f32
    %32 = vector.broadcast %cst_14 : f32 to vector<16x128xf32>
    %33 = arith.mulf %31, %32 : vector<16x128xf32>
    %34 = arith.truncf %33 : vector<16x128xf32> to vector<16x128xbf16>
    %35 = vector.extract_strided_slice %30 {offsets = [0, 128], sizes = [16, 128], strides = [1, 1]} : vector<16x384xf32> to vector<16x128xf32>
    %36 = arith.truncf %35 : vector<16x128xf32> to vector<16x128xbf16>
    %37 = vector.extract_strided_slice %30 {offsets = [0, 256], sizes = [16, 128], strides = [1, 1]} : vector<16x384xf32> to vector<16x128xf32>
    %38 = arith.truncf %37 : vector<16x128xf32> to vector<16x128xbf16>
    %39 = vector.extract_strided_slice %34 {offsets = [0, 0], sizes = [16, 16], strides = [1, 1]} : vector<16x128xbf16> to vector<16x16xbf16>
    %40 = vector.shape_cast %39 : vector<16x16xbf16> to vector<2x8x16xbf16>
    %41 = vector.extract_strided_slice %36 {offsets = [0, 0], sizes = [16, 16], strides = [1, 1]} : vector<16x128xbf16> to vector<16x16xbf16>
    %42 = vector.shape_cast %41 : vector<16x16xbf16> to vector<2x8x16xbf16>
    %43 = vector.extract_strided_slice %38 {offsets = [0, 0], sizes = [16, 16], strides = [1, 1]} : vector<16x128xbf16> to vector<16x16xbf16>
    %44 = vector.shape_cast %43 : vector<16x16xbf16> to vector<2x8x16xbf16>
    "tpu.trace_start"() <{level = 10 : i32, message = "bqd,bkd->bqk"}> : () -> ()
    %cst_15 = arith.constant dense<0.000000e+00> : vector<2x8x8xf32>
    %45 = tpu.matmul %40, %42, %cst_15 {dimension_numbers = #tpu.dot_dimension_numbers<[2], [2], [1], [1], [0, 0, 0, 1, 1, 1], [0], [0]>} : vector<2x8x16xbf16>, vector<2x8x16xbf16>, vector<2x8x8xf32> -> vector<2x8x8xf32>
    "tpu.trace_stop"() : () -> ()
    %cst_16 = arith.constant dense<0xFF800000> : vector<2x8xf32>
    %46 = vector.multi_reduction <maximumf>, %45, %cst_16 [2] : vector<2x8x8xf32> to vector<2x8xf32>
    %47 = vector.shape_cast %46 : vector<2x8xf32> to vector<2x8x1xf32>
    %48 = vector.broadcast %47 : vector<2x8x1xf32> to vector<2x8x8xf32>
    %49 = arith.subf %45, %48 : vector<2x8x8xf32>
    %50 = math.exp %49 : vector<2x8x8xf32>
    %cst_17 = arith.constant dense<0.000000e+00> : vector<2x8xf32>
    %51 = vector.multi_reduction <add>, %50, %cst_17 [2] : vector<2x8x8xf32> to vector<2x8xf32>
    %52 = vector.shape_cast %51 : vector<2x8xf32> to vector<2x8x1xf32>
    %53 = tpu.reciprocal %52 {approx = true} : vector<2x8x1xf32> -> vector<2x8x1xf32>
    %54 = vector.broadcast %53 : vector<2x8x1xf32> to vector<2x8x8xf32>
    %55 = arith.mulf %50, %54 : vector<2x8x8xf32>
    %56 = arith.truncf %55 : vector<2x8x8xf32> to vector<2x8x8xbf16>
    "tpu.trace_start"() <{level = 10 : i32, message = "bqk,bkd->bqd"}> : () -> ()
    %cst_18 = arith.constant dense<0.000000e+00> : vector<2x8x16xf32>
    %57 = tpu.matmul %56, %44, %cst_18 {dimension_numbers = #tpu.dot_dimension_numbers<[2], [1], [1], [2], [0, 0, 0, 1, 1, 2], [0], [0]>} : vector<2x8x8xbf16>, vector<2x8x16xbf16>, vector<2x8x16xf32> -> vector<2x8x16xf32>
    "tpu.trace_stop"() : () -> ()
    %58 = vector.extract_strided_slice %34 {offsets = [0, 16], sizes = [16, 16], strides = [1, 1]} : vector<16x128xbf16> to vector<16x16xbf16>
    %59 = vector.shape_cast %58 : vector<16x16xbf16> to vector<2x8x16xbf16>
    %60 = vector.extract_strided_slice %36 {offsets = [0, 16], sizes = [16, 16], strides = [1, 1]} : vector<16x128xbf16> to vector<16x16xbf16>
    %61 = vector.shape_cast %60 : vector<16x16xbf16> to vector<2x8x16xbf16>
    %62 = vector.extract_strided_slice %38 {offsets = [0, 16], sizes = [16, 16], strides = [1, 1]} : vector<16x128xbf16> to vector<16x16xbf16>
    %63 = vector.shape_cast %62 : vector<16x16xbf16> to vector<2x8x16xbf16>
    "tpu.trace_start"() <{level = 10 : i32, message = "bqd,bkd->bqk"}> : () -> ()
    %cst_19 = arith.constant dense<0.000000e+00> : vector<2x8x8xf32>
    %64 = tpu.matmul %59, %61, %cst_19 {dimension_numbers = #tpu.dot_dimension_numbers<[2], [2], [1], [1], [0, 0, 0, 1, 1, 1], [0], [0]>} : vector<2x8x16xbf16>, vector<2x8x16xbf16>, vector<2x8x8xf32> -> vector<2x8x8xf32>
    "tpu.trace_stop"() : () -> ()
    %cst_20 = arith.constant dense<0xFF800000> : vector<2x8xf32>
    %65 = vector.multi_reduction <maximumf>, %64, %cst_20 [2] : vector<2x8x8xf32> to vector<2x8xf32>
    %66 = vector.shape_cast %65 : vector<2x8xf32> to vector<2x8x1xf32>
    %67 = vector.broadcast %66 : vector<2x8x1xf32> to vector<2x8x8xf32>
    %68 = arith.subf %64, %67 : vector<2x8x8xf32>
    %69 = math.exp %68 : vector<2x8x8xf32>
    %cst_21 = arith.constant dense<0.000000e+00> : vector<2x8xf32>
    %70 = vector.multi_reduction <add>, %69, %cst_21 [2] : vector<2x8x8xf32> to vector<2x8xf32>
    %71 = vector.shape_cast %70 : vector<2x8xf32> to vector<2x8x1xf32>
    %72 = tpu.reciprocal %71 {approx = true} : vector<2x8x1xf32> -> vector<2x8x1xf32>
    %73 = vector.broadcast %72 : vector<2x8x1xf32> to vector<2x8x8xf32>
    %74 = arith.mulf %69, %73 : vector<2x8x8xf32>
    %75 = arith.truncf %74 : vector<2x8x8xf32> to vector<2x8x8xbf16>
    "tpu.trace_start"() <{level = 10 : i32, message = "bqk,bkd->bqd"}> : () -> ()
    %cst_22 = arith.constant dense<0.000000e+00> : vector<2x8x16xf32>
    %76 = tpu.matmul %75, %63, %cst_22 {dimension_numbers = #tpu.dot_dimension_numbers<[2], [1], [1], [2], [0, 0, 0, 1, 1, 2], [0], [0]>} : vector<2x8x8xbf16>, vector<2x8x16xbf16>, vector<2x8x16xf32> -> vector<2x8x16xf32>
    "tpu.trace_stop"() : () -> ()
    %77 = vector.extract_strided_slice %34 {offsets = [0, 32], sizes = [16, 16], strides = [1, 1]} : vector<16x128xbf16> to vector<16x16xbf16>
    %78 = vector.shape_cast %77 : vector<16x16xbf16> to vector<2x8x16xbf16>
    %79 = vector.extract_strided_slice %36 {offsets = [0, 32], sizes = [16, 16], strides = [1, 1]} : vector<16x128xbf16> to vector<16x16xbf16>
    %80 = vector.shape_cast %79 : vector<16x16xbf16> to vector<2x8x16xbf16>
    %81 = vector.extract_strided_slice %38 {offsets = [0, 32], sizes = [16, 16], strides = [1, 1]} : vector<16x128xbf16> to vector<16x16xbf16>
    %82 = vector.shape_cast %81 : vector<16x16xbf16> to vector<2x8x16xbf16>
    "tpu.trace_start"() <{level = 10 : i32, message = "bqd,bkd->bqk"}> : () -> ()
    %cst_23 = arith.constant dense<0.000000e+00> : vector<2x8x8xf32>
    %83 = tpu.matmul %78, %80, %cst_23 {dimension_numbers = #tpu.dot_dimension_numbers<[2], [2], [1], [1], [0, 0, 0, 1, 1, 1], [0], [0]>} : vector<2x8x16xbf16>, vector<2x8x16xbf16>, vector<2x8x8xf32> -> vector<2x8x8xf32>
    "tpu.trace_stop"() : () -> ()
    %cst_24 = arith.constant dense<0xFF800000> : vector<2x8xf32>
    %84 = vector.multi_reduction <maximumf>, %83, %cst_24 [2] : vector<2x8x8xf32> to vector<2x8xf32>
    %85 = vector.shape_cast %84 : vector<2x8xf32> to vector<2x8x1xf32>
    %86 = vector.broadcast %85 : vector<2x8x1xf32> to vector<2x8x8xf32>
    %87 = arith.subf %83, %86 : vector<2x8x8xf32>
    %88 = math.exp %87 : vector<2x8x8xf32>
    %cst_25 = arith.constant dense<0.000000e+00> : vector<2x8xf32>
    %89 = vector.multi_reduction <add>, %88, %cst_25 [2] : vector<2x8x8xf32> to vector<2x8xf32>
    %90 = vector.shape_cast %89 : vector<2x8xf32> to vector<2x8x1xf32>
    %91 = tpu.reciprocal %90 {approx = true} : vector<2x8x1xf32> -> vector<2x8x1xf32>
    %92 = vector.broadcast %91 : vector<2x8x1xf32> to vector<2x8x8xf32>
    %93 = arith.mulf %88, %92 : vector<2x8x8xf32>
    %94 = arith.truncf %93 : vector<2x8x8xf32> to vector<2x8x8xbf16>
    "tpu.trace_start"() <{level = 10 : i32, message = "bqk,bkd->bqd"}> : () -> ()
    %cst_26 = arith.constant dense<0.000000e+00> : vector<2x8x16xf32>
    %95 = tpu.matmul %94, %82, %cst_26 {dimension_numbers = #tpu.dot_dimension_numbers<[2], [1], [1], [2], [0, 0, 0, 1, 1, 2], [0], [0]>} : vector<2x8x8xbf16>, vector<2x8x16xbf16>, vector<2x8x16xf32> -> vector<2x8x16xf32>
    "tpu.trace_stop"() : () -> ()
    %96 = vector.extract_strided_slice %34 {offsets = [0, 48], sizes = [16, 16], strides = [1, 1]} : vector<16x128xbf16> to vector<16x16xbf16>
    %97 = vector.shape_cast %96 : vector<16x16xbf16> to vector<2x8x16xbf16>
    %98 = vector.extract_strided_slice %36 {offsets = [0, 48], sizes = [16, 16], strides = [1, 1]} : vector<16x128xbf16> to vector<16x16xbf16>
    %99 = vector.shape_cast %98 : vector<16x16xbf16> to vector<2x8x16xbf16>
    %100 = vector.extract_strided_slice %38 {offsets = [0, 48], sizes = [16, 16], strides = [1, 1]} : vector<16x128xbf16> to vector<16x16xbf16>
    %101 = vector.shape_cast %100 : vector<16x16xbf16> to vector<2x8x16xbf16>
    "tpu.trace_start"() <{level = 10 : i32, message = "bqd,bkd->bqk"}> : () -> ()
    %cst_27 = arith.constant dense<0.000000e+00> : vector<2x8x8xf32>
    %102 = tpu.matmul %97, %99, %cst_27 {dimension_numbers = #tpu.dot_dimension_numbers<[2], [2], [1], [1], [0, 0, 0, 1, 1, 1], [0], [0]>} : vector<2x8x16xbf16>, vector<2x8x16xbf16>, vector<2x8x8xf32> -> vector<2x8x8xf32>
    "tpu.trace_stop"() : () -> ()
    %cst_28 = arith.constant dense<0xFF800000> : vector<2x8xf32>
    %103 = vector.multi_reduction <maximumf>, %102, %cst_28 [2] : vector<2x8x8xf32> to vector<2x8xf32>
    %104 = vector.shape_cast %103 : vector<2x8xf32> to vector<2x8x1xf32>
    %105 = vector.broadcast %104 : vector<2x8x1xf32> to vector<2x8x8xf32>
    %106 = arith.subf %102, %105 : vector<2x8x8xf32>
    %107 = math.exp %106 : vector<2x8x8xf32>
    %cst_29 = arith.constant dense<0.000000e+00> : vector<2x8xf32>
    %108 = vector.multi_reduction <add>, %107, %cst_29 [2] : vector<2x8x8xf32> to vector<2x8xf32>
    %109 = vector.shape_cast %108 : vector<2x8xf32> to vector<2x8x1xf32>
    %110 = tpu.reciprocal %109 {approx = true} : vector<2x8x1xf32> -> vector<2x8x1xf32>
    %111 = vector.broadcast %110 : vector<2x8x1xf32> to vector<2x8x8xf32>
    %112 = arith.mulf %107, %111 : vector<2x8x8xf32>
    %113 = arith.truncf %112 : vector<2x8x8xf32> to vector<2x8x8xbf16>
    "tpu.trace_start"() <{level = 10 : i32, message = "bqk,bkd->bqd"}> : () -> ()
    %cst_30 = arith.constant dense<0.000000e+00> : vector<2x8x16xf32>
    %114 = tpu.matmul %113, %101, %cst_30 {dimension_numbers = #tpu.dot_dimension_numbers<[2], [1], [1], [2], [0, 0, 0, 1, 1, 2], [0], [0]>} : vector<2x8x8xbf16>, vector<2x8x16xbf16>, vector<2x8x16xf32> -> vector<2x8x16xf32>
    "tpu.trace_stop"() : () -> ()
    %115 = vector.extract_strided_slice %34 {offsets = [0, 64], sizes = [16, 16], strides = [1, 1]} : vector<16x128xbf16> to vector<16x16xbf16>
    %116 = vector.shape_cast %115 : vector<16x16xbf16> to vector<2x8x16xbf16>
    %117 = vector.extract_strided_slice %36 {offsets = [0, 64], sizes = [16, 16], strides = [1, 1]} : vector<16x128xbf16> to vector<16x16xbf16>
    %118 = vector.shape_cast %117 : vector<16x16xbf16> to vector<2x8x16xbf16>
    %119 = vector.extract_strided_slice %38 {offsets = [0, 64], sizes = [16, 16], strides = [1, 1]} : vector<16x128xbf16> to vector<16x16xbf16>
    %120 = vector.shape_cast %119 : vector<16x16xbf16> to vector<2x8x16xbf16>
    "tpu.trace_start"() <{level = 10 : i32, message = "bqd,bkd->bqk"}> : () -> ()
    %cst_31 = arith.constant dense<0.000000e+00> : vector<2x8x8xf32>
    %121 = tpu.matmul %116, %118, %cst_31 {dimension_numbers = #tpu.dot_dimension_numbers<[2], [2], [1], [1], [0, 0, 0, 1, 1, 1], [0], [0]>} : vector<2x8x16xbf16>, vector<2x8x16xbf16>, vector<2x8x8xf32> -> vector<2x8x8xf32>
    "tpu.trace_stop"() : () -> ()
    %cst_32 = arith.constant dense<0xFF800000> : vector<2x8xf32>
    %122 = vector.multi_reduction <maximumf>, %121, %cst_32 [2] : vector<2x8x8xf32> to vector<2x8xf32>
    %123 = vector.shape_cast %122 : vector<2x8xf32> to vector<2x8x1xf32>
    %124 = vector.broadcast %123 : vector<2x8x1xf32> to vector<2x8x8xf32>
    %125 = arith.subf %121, %124 : vector<2x8x8xf32>
    %126 = math.exp %125 : vector<2x8x8xf32>
    %cst_33 = arith.constant dense<0.000000e+00> : vector<2x8xf32>
    %127 = vector.multi_reduction <add>, %126, %cst_33 [2] : vector<2x8x8xf32> to vector<2x8xf32>
    %128 = vector.shape_cast %127 : vector<2x8xf32> to vector<2x8x1xf32>
    %129 = tpu.reciprocal %128 {approx = true} : vector<2x8x1xf32> -> vector<2x8x1xf32>
    %130 = vector.broadcast %129 : vector<2x8x1xf32> to vector<2x8x8xf32>
    %131 = arith.mulf %126, %130 : vector<2x8x8xf32>
    %132 = arith.truncf %131 : vector<2x8x8xf32> to vector<2x8x8xbf16>
    "tpu.trace_start"() <{level = 10 : i32, message = "bqk,bkd->bqd"}> : () -> ()
    %cst_34 = arith.constant dense<0.000000e+00> : vector<2x8x16xf32>
    %133 = tpu.matmul %132, %120, %cst_34 {dimension_numbers = #tpu.dot_dimension_numbers<[2], [1], [1], [2], [0, 0, 0, 1, 1, 2], [0], [0]>} : vector<2x8x8xbf16>, vector<2x8x16xbf16>, vector<2x8x16xf32> -> vector<2x8x16xf32>
    "tpu.trace_stop"() : () -> ()
    %134 = vector.extract_strided_slice %34 {offsets = [0, 80], sizes = [16, 16], strides = [1, 1]} : vector<16x128xbf16> to vector<16x16xbf16>
    %135 = vector.shape_cast %134 : vector<16x16xbf16> to vector<2x8x16xbf16>
    %136 = vector.extract_strided_slice %36 {offsets = [0, 80], sizes = [16, 16], strides = [1, 1]} : vector<16x128xbf16> to vector<16x16xbf16>
    %137 = vector.shape_cast %136 : vector<16x16xbf16> to vector<2x8x16xbf16>
    %138 = vector.extract_strided_slice %38 {offsets = [0, 80], sizes = [16, 16], strides = [1, 1]} : vector<16x128xbf16> to vector<16x16xbf16>
    %139 = vector.shape_cast %138 : vector<16x16xbf16> to vector<2x8x16xbf16>
    "tpu.trace_start"() <{level = 10 : i32, message = "bqd,bkd->bqk"}> : () -> ()
    %cst_35 = arith.constant dense<0.000000e+00> : vector<2x8x8xf32>
    %140 = tpu.matmul %135, %137, %cst_35 {dimension_numbers = #tpu.dot_dimension_numbers<[2], [2], [1], [1], [0, 0, 0, 1, 1, 1], [0], [0]>} : vector<2x8x16xbf16>, vector<2x8x16xbf16>, vector<2x8x8xf32> -> vector<2x8x8xf32>
    "tpu.trace_stop"() : () -> ()
    %cst_36 = arith.constant dense<0xFF800000> : vector<2x8xf32>
    %141 = vector.multi_reduction <maximumf>, %140, %cst_36 [2] : vector<2x8x8xf32> to vector<2x8xf32>
    %142 = vector.shape_cast %141 : vector<2x8xf32> to vector<2x8x1xf32>
    %143 = vector.broadcast %142 : vector<2x8x1xf32> to vector<2x8x8xf32>
    %144 = arith.subf %140, %143 : vector<2x8x8xf32>
    %145 = math.exp %144 : vector<2x8x8xf32>
    %cst_37 = arith.constant dense<0.000000e+00> : vector<2x8xf32>
    %146 = vector.multi_reduction <add>, %145, %cst_37 [2] : vector<2x8x8xf32> to vector<2x8xf32>
    %147 = vector.shape_cast %146 : vector<2x8xf32> to vector<2x8x1xf32>
    %148 = tpu.reciprocal %147 {approx = true} : vector<2x8x1xf32> -> vector<2x8x1xf32>
    %149 = vector.broadcast %148 : vector<2x8x1xf32> to vector<2x8x8xf32>
    %150 = arith.mulf %145, %149 : vector<2x8x8xf32>
    %151 = arith.truncf %150 : vector<2x8x8xf32> to vector<2x8x8xbf16>
    "tpu.trace_start"() <{level = 10 : i32, message = "bqk,bkd->bqd"}> : () -> ()
    %cst_38 = arith.constant dense<0.000000e+00> : vector<2x8x16xf32>
    %152 = tpu.matmul %151, %139, %cst_38 {dimension_numbers = #tpu.dot_dimension_numbers<[2], [1], [1], [2], [0, 0, 0, 1, 1, 2], [0], [0]>} : vector<2x8x8xbf16>, vector<2x8x16xbf16>, vector<2x8x16xf32> -> vector<2x8x16xf32>
    "tpu.trace_stop"() : () -> ()
    %153 = vector.extract_strided_slice %34 {offsets = [0, 96], sizes = [16, 16], strides = [1, 1]} : vector<16x128xbf16> to vector<16x16xbf16>
    %154 = vector.shape_cast %153 : vector<16x16xbf16> to vector<2x8x16xbf16>
    %155 = vector.extract_strided_slice %36 {offsets = [0, 96], sizes = [16, 16], strides = [1, 1]} : vector<16x128xbf16> to vector<16x16xbf16>
    %156 = vector.shape_cast %155 : vector<16x16xbf16> to vector<2x8x16xbf16>
    %157 = vector.extract_strided_slice %38 {offsets = [0, 96], sizes = [16, 16], strides = [1, 1]} : vector<16x128xbf16> to vector<16x16xbf16>
    %158 = vector.shape_cast %157 : vector<16x16xbf16> to vector<2x8x16xbf16>
    "tpu.trace_start"() <{level = 10 : i32, message = "bqd,bkd->bqk"}> : () -> ()
    %cst_39 = arith.constant dense<0.000000e+00> : vector<2x8x8xf32>
    %159 = tpu.matmul %154, %156, %cst_39 {dimension_numbers = #tpu.dot_dimension_numbers<[2], [2], [1], [1], [0, 0, 0, 1, 1, 1], [0], [0]>} : vector<2x8x16xbf16>, vector<2x8x16xbf16>, vector<2x8x8xf32> -> vector<2x8x8xf32>
    "tpu.trace_stop"() : () -> ()
    %cst_40 = arith.constant dense<0xFF800000> : vector<2x8xf32>
    %160 = vector.multi_reduction <maximumf>, %159, %cst_40 [2] : vector<2x8x8xf32> to vector<2x8xf32>
    %161 = vector.shape_cast %160 : vector<2x8xf32> to vector<2x8x1xf32>
    %162 = vector.broadcast %161 : vector<2x8x1xf32> to vector<2x8x8xf32>
    %163 = arith.subf %159, %162 : vector<2x8x8xf32>
    %164 = math.exp %163 : vector<2x8x8xf32>
    %cst_41 = arith.constant dense<0.000000e+00> : vector<2x8xf32>
    %165 = vector.multi_reduction <add>, %164, %cst_41 [2] : vector<2x8x8xf32> to vector<2x8xf32>
    %166 = vector.shape_cast %165 : vector<2x8xf32> to vector<2x8x1xf32>
    %167 = tpu.reciprocal %166 {approx = true} : vector<2x8x1xf32> -> vector<2x8x1xf32>
    %168 = vector.broadcast %167 : vector<2x8x1xf32> to vector<2x8x8xf32>
    %169 = arith.mulf %164, %168 : vector<2x8x8xf32>
    %170 = arith.truncf %169 : vector<2x8x8xf32> to vector<2x8x8xbf16>
    "tpu.trace_start"() <{level = 10 : i32, message = "bqk,bkd->bqd"}> : () -> ()
    %cst_42 = arith.constant dense<0.000000e+00> : vector<2x8x16xf32>
    %171 = tpu.matmul %170, %158, %cst_42 {dimension_numbers = #tpu.dot_dimension_numbers<[2], [1], [1], [2], [0, 0, 0, 1, 1, 2], [0], [0]>} : vector<2x8x8xbf16>, vector<2x8x16xbf16>, vector<2x8x16xf32> -> vector<2x8x16xf32>
    "tpu.trace_stop"() : () -> ()
    %172 = vector.extract_strided_slice %34 {offsets = [0, 112], sizes = [16, 16], strides = [1, 1]} : vector<16x128xbf16> to vector<16x16xbf16>
    %173 = vector.shape_cast %172 : vector<16x16xbf16> to vector<2x8x16xbf16>
    %174 = vector.extract_strided_slice %36 {offsets = [0, 112], sizes = [16, 16], strides = [1, 1]} : vector<16x128xbf16> to vector<16x16xbf16>
    %175 = vector.shape_cast %174 : vector<16x16xbf16> to vector<2x8x16xbf16>
    %176 = vector.extract_strided_slice %38 {offsets = [0, 112], sizes = [16, 16], strides = [1, 1]} : vector<16x128xbf16> to vector<16x16xbf16>
    %177 = vector.shape_cast %176 : vector<16x16xbf16> to vector<2x8x16xbf16>
    "tpu.trace_start"() <{level = 10 : i32, message = "bqd,bkd->bqk"}> : () -> ()
    %cst_43 = arith.constant dense<0.000000e+00> : vector<2x8x8xf32>
    %178 = tpu.matmul %173, %175, %cst_43 {dimension_numbers = #tpu.dot_dimension_numbers<[2], [2], [1], [1], [0, 0, 0, 1, 1, 1], [0], [0]>} : vector<2x8x16xbf16>, vector<2x8x16xbf16>, vector<2x8x8xf32> -> vector<2x8x8xf32>
    "tpu.trace_stop"() : () -> ()
    %cst_44 = arith.constant dense<0xFF800000> : vector<2x8xf32>
    %179 = vector.multi_reduction <maximumf>, %178, %cst_44 [2] : vector<2x8x8xf32> to vector<2x8xf32>
    %180 = vector.shape_cast %179 : vector<2x8xf32> to vector<2x8x1xf32>
    %181 = vector.broadcast %180 : vector<2x8x1xf32> to vector<2x8x8xf32>
    %182 = arith.subf %178, %181 : vector<2x8x8xf32>
    %183 = math.exp %182 : vector<2x8x8xf32>
    %cst_45 = arith.constant dense<0.000000e+00> : vector<2x8xf32>
    %184 = vector.multi_reduction <add>, %183, %cst_45 [2] : vector<2x8x8xf32> to vector<2x8xf32>
    %185 = vector.shape_cast %184 : vector<2x8xf32> to vector<2x8x1xf32>
    %186 = tpu.reciprocal %185 {approx = true} : vector<2x8x1xf32> -> vector<2x8x1xf32>
    %187 = vector.broadcast %186 : vector<2x8x1xf32> to vector<2x8x8xf32>
    %188 = arith.mulf %183, %187 : vector<2x8x8xf32>
    %189 = arith.truncf %188 : vector<2x8x8xf32> to vector<2x8x8xbf16>
    "tpu.trace_start"() <{level = 10 : i32, message = "bqk,bkd->bqd"}> : () -> ()
    %cst_46 = arith.constant dense<0.000000e+00> : vector<2x8x16xf32>
    %190 = tpu.matmul %189, %177, %cst_46 {dimension_numbers = #tpu.dot_dimension_numbers<[2], [1], [1], [2], [0, 0, 0, 1, 1, 2], [0], [0]>} : vector<2x8x8xbf16>, vector<2x8x16xbf16>, vector<2x8x16xf32> -> vector<2x8x16xf32>
    "tpu.trace_stop"() : () -> ()
    %191 = tpu.concatenate %57, %76, %95, %114, %133, %152, %171, %190 in 2 : vector<2x8x16xf32>, vector<2x8x16xf32>, vector<2x8x16xf32>, vector<2x8x16xf32>, vector<2x8x16xf32>, vector<2x8x16xf32>, vector<2x8x16xf32>, vector<2x8x16xf32> -> vector<2x8x128xf32>
    %192 = vector.shape_cast %191 : vector<2x8x128xf32> to vector<16x128xf32>
    %193 = arith.truncf %192 : vector<16x128xf32> to vector<16x128xbf16>
    %c0_47 = arith.constant 0 : index
    %c0_48 = arith.constant 0 : index
    %194 = vector.load %arg6[%c0_47, %c0_48] : memref<128x128xbf16, #tpu.memory_space<vmem>>, vector<128x128xbf16>
    %cst_49 = arith.constant dense<0.000000e+00> : vector<16x128xf32>
    %195 = tpu.matmul %193, %194, %cst_49 {dimension_numbers = #tpu.dot_dimension_numbers<[1], [0], [0], [1], [0, 0, 1, 1], [], []>} : vector<16x128xbf16>, vector<128x128xbf16>, vector<16x128xf32> -> vector<16x128xf32>
    %196 = arith.addf %0, %195 : vector<16x128xf32>
    %c0_50 = arith.constant 0 : index
    %c0_51 = arith.constant 0 : index
    %197 = vector.load %arg7[%c0_50, %c0_51] : memref<1x128xf32, #tpu.memory_space<vmem>>, vector<1x128xf32>
    %198 = vector.broadcast %197 : vector<1x128xf32> to vector<16x128xf32>
    %199 = arith.addf %196, %198 : vector<16x128xf32>
    %c0_52 = arith.constant 0 : index
    %c0_53 = arith.constant 0 : index
    %200 = vector.load %arg8[%c0_52, %c0_53] : memref<1x128xf32, #tpu.memory_space<vmem>>, vector<1x128xf32>
    %c0_54 = arith.constant 0 : index
    %c0_55 = arith.constant 0 : index
    %201 = vector.load %arg9[%c0_54, %c0_55] : memref<1x128xf32, #tpu.memory_space<vmem>>, vector<1x128xf32>
    %cst_56 = arith.constant dense<0.000000e+00> : vector<16xf32>
    %202 = vector.multi_reduction <add>, %199, %cst_56 [1] : vector<16x128xf32> to vector<16xf32>
    %203 = vector.shape_cast %202 : vector<16xf32> to vector<16x1xf32>
    %cst_57 = arith.constant 1.280000e+02 : f32
    %204 = vector.broadcast %cst_57 : f32 to vector<16x1xf32>
    %205 = arith.divf %203, %204 : vector<16x1xf32>
    %206 = vector.broadcast %205 : vector<16x1xf32> to vector<16x128xf32>
    %207 = arith.subf %199, %206 : vector<16x128xf32>
    %208 = arith.mulf %207, %207 : vector<16x128xf32>
    %cst_58 = arith.constant dense<0.000000e+00> : vector<16xf32>
    %209 = vector.multi_reduction <add>, %208, %cst_58 [1] : vector<16x128xf32> to vector<16xf32>
    %210 = vector.shape_cast %209 : vector<16xf32> to vector<16x1xf32>
    %cst_59 = arith.constant 1.280000e+02 : f32
    %211 = vector.broadcast %cst_59 : f32 to vector<16x1xf32>
    %212 = arith.divf %210, %211 : vector<16x1xf32>
    %213 = vector.broadcast %205 : vector<16x1xf32> to vector<16x128xf32>
    %214 = arith.subf %199, %213 : vector<16x128xf32>
    %cst_60 = arith.constant 9.99999974E-6 : f32
    %215 = vector.broadcast %cst_60 : f32 to vector<16x1xf32>
    %216 = arith.addf %212, %215 : vector<16x1xf32>
    %217 = math.rsqrt %216 : vector<16x1xf32>
    %218 = vector.broadcast %217 : vector<16x1xf32> to vector<16x128xf32>
    %219 = arith.mulf %214, %218 : vector<16x128xf32>
    %220 = vector.broadcast %200 : vector<1x128xf32> to vector<16x128xf32>
    %221 = arith.mulf %219, %220 : vector<16x128xf32>
    %222 = vector.broadcast %201 : vector<1x128xf32> to vector<16x128xf32>
    %223 = arith.addf %221, %222 : vector<16x128xf32>
    %224 = arith.truncf %223 : vector<16x128xf32> to vector<16x128xbf16>
    %c0_61 = arith.constant 0 : index
    %c0_62 = arith.constant 0 : index
    %225 = vector.load %arg10[%c0_61, %c0_62] : memref<128x512xbf16, #tpu.memory_space<vmem>>, vector<128x512xbf16>
    %cst_63 = arith.constant dense<0.000000e+00> : vector<16x512xf32>
    %226 = tpu.matmul %224, %225, %cst_63 {dimension_numbers = #tpu.dot_dimension_numbers<[1], [0], [0], [1], [0, 0, 1, 1], [], []>} : vector<16x128xbf16>, vector<128x512xbf16>, vector<16x512xf32> -> vector<16x512xf32>
    %c0_64 = arith.constant 0 : index
    %c0_65 = arith.constant 0 : index
    %227 = vector.load %arg11[%c0_64, %c0_65] : memref<1x512xf32, #tpu.memory_space<vmem>>, vector<1x512xf32>
    %228 = vector.broadcast %227 : vector<1x512xf32> to vector<16x512xf32>
    %229 = arith.addf %226, %228 : vector<16x512xf32>
    %cst_66 = arith.constant 0.000000e+00 : f32
    %230 = vector.broadcast %cst_66 : f32 to vector<16x512xf32>
    %231 = arith.maximumf %229, %230 : vector<16x512xf32>
    %232 = arith.truncf %231 : vector<16x512xf32> to vector<16x512xbf16>
    %c0_67 = arith.constant 0 : index
    %c0_68 = arith.constant 0 : index
    %233 = vector.load %arg12[%c0_67, %c0_68] : memref<512x128xbf16, #tpu.memory_space<vmem>>, vector<512x128xbf16>
    %cst_69 = arith.constant dense<0.000000e+00> : vector<16x128xf32>
    %234 = tpu.matmul %232, %233, %cst_69 {dimension_numbers = #tpu.dot_dimension_numbers<[1], [0], [0], [1], [0, 0, 1, 1], [], []>} : vector<16x512xbf16>, vector<512x128xbf16>, vector<16x128xf32> -> vector<16x128xf32>
    %c0_70 = arith.constant 0 : index
    %c0_71 = arith.constant 0 : index
    %235 = vector.load %arg13[%c0_70, %c0_71] : memref<1x128xf32, #tpu.memory_space<vmem>>, vector<1x128xf32>
    %236 = vector.broadcast %235 : vector<1x128xf32> to vector<16x128xf32>
    %237 = arith.addf %234, %236 : vector<16x128xf32>
    %238 = arith.addf %199, %237 : vector<16x128xf32>
    %c0_72 = arith.constant 0 : index
    %c0_73 = arith.constant 0 : index
    %239 = vector.load %arg14[%c0_72, %c0_73] : memref<16x128xf32, #tpu.memory_space<vmem>>, vector<16x128xf32>
    tpu.vector_store %arg14[%c0_72, %c0_73], %238 {strides = array<i32>} : memref<16x128xf32, #tpu.memory_space<vmem>>, vector<16x128xf32>,
    return
  }
  func.func @transform_0(%arg0: i32) -> (i32, i32) {
    %c0_i32 = arith.constant 0 : i32
    %c0_i32_0 = arith.constant 0 : i32
    return %arg0, %c0_i32 : i32, i32
  }
  func.func @transform_1(%arg0: i32) -> (i32, i32) {
    %c0_i32 = arith.constant 0 : i32
    %c0_i32_0 = arith.constant 0 : i32
    %c0_i32_1 = arith.constant 0 : i32
    return %c0_i32, %c0_i32_0 : i32, i32
  }
  func.func @transform_2(%arg0: i32) -> (i32, i32) {
    %c0_i32 = arith.constant 0 : i32
    %c0_i32_0 = arith.constant 0 : i32
    %c0_i32_1 = arith.constant 0 : i32
    return %c0_i32, %c0_i32_0 : i32, i32
  }
  func.func @transform_3(%arg0: i32) -> (i32, i32) {
    %c0_i32 = arith.constant 0 : i32
    %c0_i32_0 = arith.constant 0 : i32
    %c0_i32_1 = arith.constant 0 : i32
    return %c0_i32, %c0_i32_0 : i32, i32
  }
  func.func @transform_4(%arg0: i32) -> (i32, i32) {
    %c0_i32 = arith.constant 0 : i32
    %c0_i32_0 = arith.constant 0 : i32
    %c0_i32_1 = arith.constant 0 : i32
    return %c0_i32, %c0_i32_0 : i32, i32
  }
  func.func @transform_5(%arg0: i32) -> (i32, i32) {
    %c0_i32 = arith.constant 0 : i32
    %c0_i32_0 = arith.constant 0 : i32
    %c0_i32_1 = arith.constant 0 : i32
    return %c0_i32, %c0_i32_0 : i32, i32
  }
  func.func @transform_6(%arg0: i32) -> (i32, i32) {
    %c0_i32 = arith.constant 0 : i32
    %c0_i32_0 = arith.constant 0 : i32
    %c0_i32_1 = arith.constant 0 : i32
    return %c0_i32, %c0_i32_0 : i32, i32
  }
  func.func @transform_7(%arg0: i32) -> (i32, i32) {
    %c0_i32 = arith.constant 0 : i32
    %c0_i32_0 = arith.constant 0 : i32
    %c0_i32_1 = arith.constant 0 : i32
    return %c0_i32, %c0_i32_0 : i32, i32
  }
  func.func @transform_8(%arg0: i32) -> (i32, i32) {
    %c0_i32 = arith.constant 0 : i32
    %c0_i32_0 = arith.constant 0 : i32
    %c0_i32_1 = arith.constant 0 : i32
    return %c0_i32, %c0_i32_0 : i32, i32
  }
  func.func @transform_9(%arg0: i32) -> (i32, i32) {
    %c0_i32 = arith.constant 0 : i32
    %c0_i32_0 = arith.constant 0 : i32
    %c0_i32_1 = arith.constant 0 : i32
    return %c0_i32, %c0_i32_0 : i32, i32
  }
  func.func @transform_10(%arg0: i32) -> (i32, i32) {
    %c0_i32 = arith.constant 0 : i32
    %c0_i32_0 = arith.constant 0 : i32
    %c0_i32_1 = arith.constant 0 : i32
    return %c0_i32, %c0_i32_0 : i32, i32
  }
  func.func @transform_11(%arg0: i32) -> (i32, i32) {
    %c0_i32 = arith.constant 0 : i32
    %c0_i32_0 = arith.constant 0 : i32
    %c0_i32_1 = arith.constant 0 : i32
    return %c0_i32, %c0_i32_0 : i32, i32
  }
  func.func @transform_12(%arg0: i32) -> (i32, i32) {
    %c0_i32 = arith.constant 0 : i32
    %c0_i32_0 = arith.constant 0 : i32
    %c0_i32_1 = arith.constant 0 : i32
    return %c0_i32, %c0_i32_0 : i32, i32
  }
  func.func @transform_13(%arg0: i32) -> (i32, i32) {
    %c0_i32 = arith.constant 0 : i32
    %c0_i32_0 = arith.constant 0 : i32
    return %arg0, %c0_i32 : i32, i32
  }
}

</mosaic_0001>

<bundles_post_ra>
// kernel: tpu_custom_call.1
= control target key start
LH: loop header
LB: loop body
LE: loop exit
PB: predicated region body
PF: predicated region fallthrough
CT: control target
= control target key end

     0   :  { %18 = vsyncpa [#allocation3], 0  ;;  %s4733_s0 = inlined_call_operand.hbm [shape: f32[16,128], index: 0, kind: input, shape index: {}]   ;;  %s4734_s1 = inlined_call_operand.hbm [shape: f32[1,128], index: 1, kind: input, shape index: {}]   ;;  %s4735_s2 = inlined_call_operand.hbm [shape: f32[1,128], index: 2, kind: input, shape index: {}]   ;;  %s4736_s3 = inlined_call_operand.hbm [shape: bf16[128,384], index: 3, kind: input, shape index: {}]   ;;  %s4737_s4 = inlined_call_operand.vmem [shape: f32[1,384], index: 4, kind: input, shape index: {}]   ;;  %s4738_s5 = inlined_call_operand.hbm [shape: bf16[128,128], index: 5, kind: input, shape index: {}]   ;;  %s4739_s6 = inlined_call_operand.vmem [shape: f32[1,128], index: 6, kind: input, shape index: {}]   ;;  %s4740_s7 = inlined_call_operand.vmem [shape: f32[1,128], index: 7, kind: input, shape index: {}]   ;;  %s4741_s8 = inlined_call_operand.vmem [shape: f32[1,128], index: 8, kind: input, shape index: {}]   ;;  %s4742_s9 = inlined_call_operand.hbm [shape: bf16[128,512], index: 9, kind: input, shape index: {}]   ;;  %s4743_s10 = inlined_call_operand.vmem [shape: f32[1,512], index: 10, kind: input, shape index: {}]   ;;  %s4744_s11 = inlined_call_operand.hbm [shape: bf16[512,128], index: 11, kind: input, shape index: {}]   ;;  %s4745_s12 = inlined_call_operand.vmem [shape: f32[1,128], index: 12, kind: input, shape index: {}]   ;;  %s4746_s13 = inlined_call_operand.hbm [shape: f32[16,128], index: 13, kind: output, shape index: {}]  }
   0x1   :  { %19 = vsyncpa [#allocation6], 0 }
   0x2   :  { %20 = vsyncpa [#allocation9], 0 }
   0x3   :  { %21 = vsyncpa [#allocation12], 0 }
   0x4   :  { %22 = vsyncpa [#allocation4], 0  ;;  %s4071_s25 = smov [#allocation5]   ;;  %s4072_s27 = smov [#allocation8]  }
   0x5   :  { %s41_s26 = sshll.u32 %s4071_s25, 4  ;;  %s60_s28 = sshll.u32 %s4072_s27, 4  ;;  %s42_s26 = int_to_ptr.vmem [resolvable:$true] %s41_s26  ;;  %s4165_s28 = int_to_ptr.vmem [resolvable:$true] %s60_s28 }
   0x6   :  { %s3885_s14 = scalar_lea.hbm %s4734_s1, 16 }
   0x7   :  { %p3886_p0 = scmp.ne.s32.totalorder %s4734_s1, %s3885_s14  ;;  %p3889_p1 = scmp.lt.u32.totalorder %s3885_s14, %s4734_s1 }
   0x9   :  { %p3891_p2 = pnand %p3889_p1, %p3886_p0 }
   0xb   :  { %3894 = shalt.err (!%p3891_p2)
}
   0xc   :  { %s3895_s19 = scalar_lea.vmem %s42_s26, 16  ;;  %s3899_s20 = scalar_lea.vmem %s42_s26, 32 }
   0xd   :  { %p3896_p3 = scmp.ne.s32.totalorder %s42_s26, %s3895_s19  ;;  %p3900_p4 = scmp.lt.s32.totalorder %s42_s26, %s42_s26 }
   0xe   :  { %p3901_p5 = scmp.lt.s32.totalorder %s3899_s20, %s3895_s19 }
  0x10   :  { %p3902_p6 = por %p3901_p5, %p3900_p4 }
  0x12   :  { %p3903_p7 = pnand %p3902_p6, %p3896_p3 }
  0x14   :  { %3906 = shalt.err (!%p3903_p7)
}
  0x15   :  { %44 = dma.hbm_to_vmem [thread:$0]  %s4734_s1, 16, %s42_s26, [#allocation6]  }
  0x16   :  { %s3907_s25 = scalar_lea.hbm %s4736_s3, 3072 }
  0x17   :  { %p3908_p8 = scmp.ne.s32.totalorder %s4736_s3, %s3907_s25  ;;  %p3911_p9 = scmp.lt.u32.totalorder %s3907_s25, %s4736_s3 }
  0x19   :  { %p3913_p10 = pnand %p3911_p9, %p3908_p8 }
  0x1b   :  { %3916 = shalt.err (!%p3913_p10)
}
  0x1c   :  { %s3917_s15 = scalar_lea.vmem %s4165_s28, 3072  ;;  %p3922_p12 = scmp.lt.s32.totalorder %s4165_s28, %s4165_s28 }
  0x1d   :  { %p3918_p11 = scmp.ne.s32.totalorder %s4165_s28, %s3917_s15  ;;  %p3923_p13 = scmp.lt.s32.totalorder %s3917_s15, %s3917_s15 }
  0x1f   :  { %p3924_p0 = por %p3923_p13, %p3922_p12 }
  0x21   :  { %p3925_p1 = pnand %p3924_p0, %p3918_p11 }
  0x23   :  { %3928 = shalt.err (!%p3925_p1)
}
  0x24   :  { %s4073_s1 = smov 192   ;;  %s4074_s26 = smov 12  }
  0x25   :  { %66 = dma.hbm_to_vmem [thread:$0]  %s4736_s3, 3072, %s4165_s28, [#allocation9], %s4073_s1, %s4073_s1, %s4074_s26  }
  0x26   :  { %s4075_s18 = smov [#allocation11]   ;;  %s3929_s22 = scalar_lea.hbm %s4742_s9, 4096 }
  0x27   :  { %s92_s19 = sshll.u32 %s4075_s18, 4  ;;  %p3930_p2 = scmp.ne.s32.totalorder %s4742_s9, %s3929_s22  ;;  %s93_s19 = int_to_ptr.vmem [resolvable:$true] %s92_s19 }
  0x28   :  { %p3933_p3 = scmp.lt.u32.totalorder %s3929_s22, %s4742_s9 }
  0x2a   :  { %p3935_p4 = pnand %p3933_p3, %p3930_p2 }
  0x2c   :  { %3938 = shalt.err (!%p3935_p4)
}
  0x2d   :  { %s3939_s29 = scalar_lea.vmem %s93_s19, 4096  ;;  %p3944_p6 = scmp.lt.s32.totalorder %s93_s19, %s93_s19 }
  0x2e   :  { %p3940_p5 = scmp.ne.s32.totalorder %s93_s19, %s3939_s29  ;;  %p3945_p7 = scmp.lt.s32.totalorder %s3939_s29, %s3939_s29 }
  0x30   :  { %p3946_p8 = por %p3945_p7, %p3944_p6 }
  0x32   :  { %p3947_p9 = pnand %p3946_p8, %p3940_p5 }
  0x34   :  { %3950 = shalt.err (!%p3947_p9)
}
  0x35   :  { %s4076_s3 = smov 256   ;;  %s4077_s28 = smov 16  }
  0x36   :  { %98 = dma.hbm_to_vmem [thread:$0]  %s4742_s9, 4096, %s93_s19, [#allocation12], %s4076_s3, %s4076_s3, %s4077_s28  }
  0x37   :  { %s4078_s15 = smov [#allocation2]   ;;  %s3951_s17 = scalar_lea.hbm %s4733_s0, 256 }
  0x38   :  { %s28_s1 = sshll.u32 %s4078_s15, 4  ;;  %p3952_p10 = scmp.ne.s32.totalorder %s4733_s0, %s3951_s17  ;;  %s29_s1 = int_to_ptr.vmem [resolvable:$true] %s28_s1 }
  0x39   :  { %p3955_p11 = scmp.lt.u32.totalorder %s3951_s17, %s4733_s0 }
  0x3b   :  { %p3957_p12 = pnand %p3955_p11, %p3952_p10 }
  0x3d   :  { %3960 = shalt.err (!%p3957_p12)
}
  0x3e   :  { %s3961_s23 = scalar_lea.vmem %s29_s1, 256  ;;  %p3966_p0 = scmp.lt.s32.totalorder %s29_s1, %s29_s1 }
  0x3f   :  { %p3962_p13 = scmp.ne.s32.totalorder %s29_s1, %s3961_s23  ;;  %p3967_p1 = scmp.lt.s32.totalorder %s3961_s23, %s3961_s23 }
  0x41   :  { %p3968_p2 = por %p3967_p1, %p3966_p0 }
  0x43   :  { %p3969_p3 = pnand %p3968_p2, %p3962_p13 }
  0x45   :  { %3972 = shalt.err (!%p3969_p3)
}
  0x46   :  { %s4079_s9 = smov 128   ;;  %s4080_s19 = smov 8  }
  0x47   :  { %34 = dma.hbm_to_vmem [thread:$0]  %s4733_s0, 256, %s29_s1, [#allocation3], %s4079_s9, %s4079_s9, %s4080_s19  }
  0x48   :  { %s4081_s27 = smov [#allocation7]   ;;  %s4082_s3 = smov [#allocation10]  }
  0x49   :  { %s51_s29 = sshll.u32 %s4081_s27, 4  ;;  %s74_s30 = sshll.u32 %s4082_s3, 4  ;;  %s52_s29 = int_to_ptr.vmem [resolvable:$true] %s51_s29  ;;  %s4224_s30 = int_to_ptr.vmem [resolvable:$true] %s74_s30 }
  0x4a   :  { %s3973_s26 = scalar_lea.hbm %s4735_s2, 16 }
  0x4b   :  { %p3974_p4 = scmp.ne.s32.totalorder %s4735_s2, %s3973_s26  ;;  %p3977_p5 = scmp.lt.u32.totalorder %s3973_s26, %s4735_s2 }
  0x4d   :  { %p3979_p6 = pnand %p3977_p5, %p3974_p4 }
  0x4f   :  { %3982 = shalt.err (!%p3979_p6)
}
  0x50   :  { %s3983_s0 = scalar_lea.vmem %s52_s29, 16  ;;  %s3987_s1 = scalar_lea.vmem %s52_s29, 32 }
  0x51   :  { %p3984_p7 = scmp.ne.s32.totalorder %s52_s29, %s3983_s0  ;;  %p3988_p8 = scmp.lt.s32.totalorder %s52_s29, %s52_s29 }
  0x52   :  { %p3989_p9 = scmp.lt.s32.totalorder %s3987_s1, %s3983_s0 }
  0x54   :  { %p3990_p10 = por %p3989_p9, %p3988_p8 }
  0x56   :  { %p3991_p11 = pnand %p3990_p10, %p3984_p7 }
  0x58   :  { %3994 = shalt.err (!%p3991_p11)
}
  0x59   :  { %54 = dma.hbm_to_vmem [thread:$0]  %s4735_s2, 16, %s52_s29, [#allocation6]  }
  0x5a   :  { %s3995_s25 = scalar_lea.hbm %s4738_s5, 1024 }
  0x5b   :  { %p3996_p12 = scmp.ne.s32.totalorder %s4738_s5, %s3995_s25  ;;  %p3999_p13 = scmp.lt.u32.totalorder %s3995_s25, %s4738_s5 }
  0x5d   :  { %p4001_p0 = pnand %p3999_p13, %p3996_p12 }
  0x5f   :  { %4004 = shalt.err (!%p4001_p0)
}
  0x60   :  { %s4005_s26 = scalar_lea.vmem %s4224_s30, 1024  ;;  %p4010_p2 = scmp.lt.s32.totalorder %s4224_s30, %s4224_s30 }
  0x61   :  { %p4006_p1 = scmp.ne.s32.totalorder %s4224_s30, %s4005_s26  ;;  %p4011_p3 = scmp.lt.s32.totalorder %s4005_s26, %s4005_s26 }
  0x63   :  { %p4012_p4 = por %p4011_p3, %p4010_p2 }
  0x65   :  { %p4013_p5 = pnand %p4012_p4, %p4006_p1 }
  0x67   :  { %4016 = shalt.err (!%p4013_p5)
}
  0x68   :  { %s4083_s2 = smov 64   ;;  %s4084_s29 = smov 4  }
  0x69   :  { %80 = dma.hbm_to_vmem [thread:$0]  %s4738_s5, 1024, %s4224_s30, [#allocation9], %s4083_s2, %s4083_s2, %s4084_s29  }
  0x6a   :  { %s4085_s18 = smov [#allocation13]   ;;  %s4017_s21 = scalar_lea.hbm %s4744_s11, 4096 }
  0x6b   :  { %s106_s20 = sshll.u32 %s4085_s18, 4  ;;  %p4018_p6 = scmp.ne.s32.totalorder %s4744_s11, %s4017_s21  ;;  %s107_s20 = int_to_ptr.vmem [resolvable:$true] %s106_s20 }
  0x6c   :  { %p4021_p7 = scmp.lt.u32.totalorder %s4017_s21, %s4744_s11 }
  0x6e   :  { %p4023_p8 = pnand %p4021_p7, %p4018_p6 }
  0x70   :  { %4026 = shalt.err (!%p4023_p8)
}
  0x71   :  { %s4027_s27 = scalar_lea.vmem %s107_s20, 4096  ;;  %p4032_p10 = scmp.lt.s32.totalorder %s107_s20, %s107_s20 }
  0x72   :  { %p4028_p9 = scmp.ne.s32.totalorder %s107_s20, %s4027_s27  ;;  %p4033_p11 = scmp.lt.s32.totalorder %s4027_s27, %s4027_s27 }
  0x74   :  { %p4034_p12 = por %p4033_p11, %p4032_p10 }
  0x76   :  { %p4035_p13 = pnand %p4034_p12, %p4028_p9 }
  0x78   :  { %4038 = shalt.err (!%p4035_p13)
}
  0x79   :  { %112 = dma.hbm_to_vmem [thread:$0]  %s4744_s11, 4096, %s107_s20, [#allocation12], %s4083_s2, %s4083_s2, %s4084_s29  }
  0x7a   :  { %4061 = dma.done.wait [#allocation3], 256  }
  0x7b   :  { %4062 = vsyncadd [#allocation3], 4294967040 }
  0x7c   :  { %4063 = dma.done.wait [#allocation6], 32  }
  0x7d   :  { %4064 = vsyncadd [#allocation6], 4294967264 }
  0x7e   :  { %4065 = dma.done.wait [#allocation9], 4096  }
  0x7f   :  { %4066 = vsyncadd [#allocation9], 4294963200 }
  0x80   :  { %4067 = dma.done.wait [#allocation12], 8192  }
  0x81   :  { %4068 = vsyncadd [#allocation12], 4294959104  ;;  %v137_v0 = vld [vmem:[#allocation2] sm:$0xff]  ;;  %v138_v1 = vld [vmem:[#allocation2 + $0x8] sm:$0xff]  ;;  %v4086_v4 = vmov 0.0   ;;  %v4087_v30 = vmov 0   ;;  %v215_v53 = vlaneseq }
  0x82   :  { %141 = vadd.xlane.f32.xlu0 %v137_v0  ;;  %v3691_v2 = vld [vmem:[#allocation8 + $0x4] ss:$12 sps:$4 sm:$0xff]   ;;  %v3693_v3 = vld [vmem:[#allocation8] ss:$12 sps:$4 sm:$0xff]   ;;  %3400 = vmatprep.subr.bf16.mxu1 %v4086_v4  ;;  %v3694_v5 = vld [vmem:[#allocation8 + $0x8] ss:$12 sps:$4 sm:$0xff]  }
  0x83   :  { %v3695_v6 = vld [vmem:[#allocation8 + $0x1c] ss:$12 sps:$4 sm:$0xff]   ;;  %358 = vmatprep.subr.bf16.mxu0 %v3691_v2  ;;  %3401 = vmatpush3.bf16.msra.mxu1 %v3694_v5  ;;  %v3697_v15 = vld [vmem:[#allocation8 + $0x18] ss:$12 sps:$4 sm:$0xff]   ;;  %v3698_v16 = vld [vmem:[#allocation8 + $0x20] ss:$12 sps:$4 sm:$0xff]  }
  0x84   :  { %359 = vmatpush1.bf16.msra.mxu0 %v3693_v3  ;;  %3402 = vmatprep.subr.bf16.mxu1 %v4086_v4  ;;  %v3699_v17 = vld [vmem:[#allocation8 + $0x34] ss:$12 sps:$4 sm:$0xff]   ;;  %v3701_v18 = vld [vmem:[#allocation8 + $0x30] ss:$12 sps:$4 sm:$0xff]   ;;  %v3702_v19 = vld [vmem:[#allocation8 + $0x38] ss:$12 sps:$4 sm:$0xff]  }
  0x85   :  { %360 = vmatprep.subr.bf16.mxu0 %v3695_v6  ;;  %v3703_v20 = vld [vmem:[#allocation8 + $0x4c] ss:$12 sps:$4 sm:$0xff]   ;;  %v3705_v21 = vld [vmem:[#allocation8 + $0x48] ss:$12 sps:$4 sm:$0xff]   ;;  %v3706_v22 = vld [vmem:[#allocation8 + $0x50] ss:$12 sps:$4 sm:$0xff]   ;;  %390 = vmatprep.mubr.bf16.mxu0 %v4087_v30 }
  0x86   :  { %143 = vadd.xlane.f32.xlu0 %v138_v1  ;;  %v3707_v23 = vld [vmem:[#allocation8 + $0x64] ss:$12 sps:$4 sm:$0xff]   ;;  %v3709_v24 = vld [vmem:[#allocation8 + $0x60] ss:$12 sps:$4 sm:$0xff]   ;;  %v3710_v25 = vld [vmem:[#allocation8 + $0x68] ss:$12 sps:$4 sm:$0xff]  }
  0x87   :  { %3403 = vmatpush3.bf16.msra.mxu1 %v3698_v16  ;;  %v3711_v26 = vld [vmem:[#allocation8 + $0x7c] ss:$12 sps:$4 sm:$0xff]   ;;  %v3713_v27 = vld [vmem:[#allocation8 + $0x78] ss:$12 sps:$4 sm:$0xff]   ;;  %v3714_v28 = vld [vmem:[#allocation8 + $0x80] ss:$12 sps:$4 sm:$0xff]  }
  0x88   :  { %361 = vmatpush1.bf16.msra.mxu0 %v3697_v15  ;;  %3404 = vmatprep.subr.bf16.mxu1 %v4086_v4  ;;  %v3715_v29 = vld [vmem:[#allocation8 + $0x94] ss:$12 sps:$4 sm:$0xff]   ;;  %vm4088_vm0 = vmmov 0   ;;  %v3717_v31 = vld [vmem:[#allocation8 + $0x90] ss:$12 sps:$4 sm:$0xff]   ;;  %v4298_v54 = vshrl.u32 %v215_v53, 7 }
  0x89   :  { %362 = vmatprep.subr.bf16.mxu0 %v3699_v17  ;;  %3416 = vmatprep.mubr.msk.bf16.mxu1 %vm4088_vm0, %v4086_v4  ;;  %v3718_v32 = vld [vmem:[#allocation8 + $0x98] ss:$12 sps:$4 sm:$0xff]   ;;  %v3721_v34 = vld [vmem:[#allocation8 + $0xa8] ss:$12 sps:$4 sm:$0xff]   ;;  %v3722_v35 = vld [vmem:[#allocation8 + $0xb0] ss:$12 sps:$4 sm:$0xff]  }
  0x8a   :  { %v3719_v33 = vld [vmem:[#allocation8 + $0xac] ss:$12 sps:$4 sm:$0xff]   ;;  %v3128_v44 = vld [vmem:[#allocation5] ss:$0 sm:$0xff]  ;;  %v3129_v48 = vld [vmem:[#allocation7] ss:$0 sm:$0xff] }
  0x8b   :  { %3405 = vmatpush3.bf16.msra.mxu1 %v3702_v19  ;;  %v221_v55 = vsub.s32 1, %v4298_v54  ;;  %v213_v56 = vld [vmem:[%s4737_s4] sm:$0x7]  ;;  %v217_v57 = vsub.s32 0, %v4298_v54  ;;  %v225_v58 = vsub.s32 2, %v4298_v54  ;;  %vm462_vm1 = vcmask 130048  }
  0x8c   :  { %363 = vmatpush1.bf16.msra.mxu0 %v3701_v18  ;;  %3406 = vmatprep.subr.bf16.mxu1 %v4086_v4  ;;  %vm583_vm2 = vcmask 1043456   ;;  %vm555_vm3 = vcmask 64512   ;;  %s4089_s4 = smov 112   ;;  %s4090_s14 = smov 96   ;;  %vm2271_vm4 = vcmask 261120   ;;  %vm2274_vm5 = vcmask 392192  }
  0x8d   :  { %364 = vmatprep.subr.bf16.mxu0 %v3703_v20  ;;  %v222_v59 = vrot.slane %v213_v56, %v221_v55  ;;  %v218_v60 = vrot.slane %v213_v56, %v217_v57  ;;  %v226_v63 = vrot.slane %v213_v56, %v225_v58  ;;  %s4091_s15 = smov 80   ;;  %s4092_s26 = smov 48   ;;  %vm2277_vm6 = vcmask 523264  }
  0x8e   :  { %s4093_s29 = smov 32   ;;  %vm2280_vm7 = vcmask 654336   ;;  %vm2283_vm8 = vcmask 785408   ;;  %vm2286_vm9 = vcmask 916480   ;;  %s4094_s0 = smov [#allocation14]  }
  0x8f   :  { %3407 = vmatpush3.bf16.msra.mxu1 %v3706_v22  ;;  %s3113_s1 = sshll.u32 %s4094_s0, 4  ;;  %s3114_s1 = int_to_ptr.vmem [resolvable:$true] %s3113_s1 }
  0x90   :  { %365 = vmatpush1.bf16.msra.mxu0 %v3705_v21  ;;  %3408 = vmatprep.subr.bf16.mxu1 %v4086_v4  ;;  %p4044_p1 = scmp.lt.s32.totalorder %s3114_s1, %s3114_s1 }
  0x91   :  { %366 = vmatprep.subr.bf16.mxu0 %v3707_v23 }
  0x93   :  { %3409 = vmatpush3.bf16.msra.mxu1 %v3710_v25 }
  0x94   :  { %367 = vmatpush1.bf16.msra.mxu0 %v3709_v24  ;;  %3410 = vmatprep.subr.bf16.mxu1 %v4086_v4 }
  0x95   :  { %368 = vmatprep.subr.bf16.mxu0 %v3711_v26 }
  0x97   :  { %3411 = vmatpush3.bf16.msra.mxu1 %v3714_v28 }
  0x98   :  { %369 = vmatpush1.bf16.msra.mxu0 %v3713_v27  ;;  %3412 = vmatprep.subr.bf16.mxu1 %v4086_v4 }
  0x99   :  { %370 = vmatprep.subr.bf16.mxu0 %v3715_v29 }
  0x9b   :  { %3413 = vmatpush3.bf16.msra.mxu1 %v3718_v32 }
  0x9c   :  { %371 = vmatpush1.bf16.msra.mxu0 %v3717_v31  ;;  %3414 = vmatprep.subr.bf16.mxu1 %v4086_v4 }
  0x9d   :  { %372 = vmatprep.subr.bf16.mxu0 %v3719_v33 }
  0x9f   :  { %3415 = vmatpush3.bf16.msra.mxu1 %v3722_v35 }
  0xa0   :  { %373 = vmatpush1.bf16.msra.mxu0 %v3721_v34  ;;  %3420 = vmatprep.subr.bf16.mxu1 %v4086_v4 }
  0xa1   :  { %3444 = vmatprep.subr.bf16.mxu0 %v4086_v4 }
 0x10f   :  { %v142_v7 = vpop.xlane.xlu0 %141 }
 0x110   :  { %v146_v8 = vmul.f32 0.0078125, %v142_v7 }
 0x112   :  { %v4273_v9 = vsub.f32 %v137_v0, %v146_v8 }
 0x113   :  { %v144_v10 = vpop.xlane.xlu0 %143 }
 0x114   :  { %v147_v11 = vmul.f32 0.0078125, %v144_v10  ;;  %v150_v12 = vmul.f32 %v4273_v9, %v4273_v9 }
 0x116   :  { %v4277_v13 = vsub.f32 %v138_v1, %v147_v11  ;;  %152 = vadd.xlane.f32.xlu1 %v150_v12 }
 0x118   :  { %v151_v14 = vmul.f32 %v4277_v13, %v4277_v13 }
 0x11a   :  { %154 = vadd.xlane.f32.xlu1 %v151_v14 }
 0x1a3   :  { %v153_v36 = vpop.xlane.xlu1 %152 }
 0x1a4   :  { %v156_v37 = vmul.f32 0.0078125, %v153_v36 }
 0x1a6   :  { %v158_v38 = vadd.f32 1e-05, %v156_v37 }
 0x1a7   :  { %v155_v39 = vpop.xlane.xlu1 %154 }
 0x1a8   :  { %3811 = vrsqrt.f32 %v158_v38  ;;  %v157_v40 = vmul.f32 0.0078125, %v155_v39 }
 0x1aa   :  { %v159_v41 = vadd.f32 1e-05, %v157_v40 }
 0x1ac   :  { %3813 = vrsqrt.f32 %v159_v41 }
 0x1b2   :  { %v3812_v42 = vpop.eup %3811 }
 0x1b3   :  { %v162_v43 = vmul.f32 %v3812_v42, %v4273_v9 }
 0x1b5   :  { %v170_v47 = vmul.f32 %v3128_v44, %v162_v43 }
 0x1b6   :  { %v3814_v45 = vpop.eup %3813 }
 0x1b7   :  { %v163_v46 = vmul.f32 %v3814_v45, %v4277_v13  ;;  %v178_v50 = vadd.f32 %v3129_v48, %v170_v47 }
 0x1b9   :  { %v171_v49 = vmul.f32 %v3128_v44, %v163_v46 }
 0x1bb   :  { %v179_v51 = vadd.f32 %v3129_v48, %v171_v49 }
 0x1bd   :  { %v180_v52 = vpack.c.bf16 %v179_v51, %v178_v50 }
 0x1bf   :  { %391 = vmatmul.mubr.bf16.vlgmr.msra.gmra.mrb[0].mxu0 %v180_v52  ;;  %3417 = vmatmul.mubr.bf16.vlgmr.msra.gmra.mrb[0].mxu1 %v180_v52 }
 0x1c0   :  { %3422 = vmatprep.mubr.msk.bf16.mxu1 %vm4088_vm0, %v4086_v4  ;;  %3446 = vmatprep.mubr.msk.bf16.mxu0 %vm4088_vm0, %v4086_v4 }
 0x292   :  { %v392_v61 = vpop.f32.mrb[0].mxu0  ;;  %v435_v62 = vpop.f32.mrb[0].mxu1 }
 0x293   :  { %v394_v0 = vpop.f32.mrb[1].mxu0  ;;  %v3418_v1 = vpop.f32.mrb[1].mxu1  ;;  %v393_v9 = vadd.f32 %v392_v61, %v218_v60  ;;  %v436_v17 = vadd.f32 %v435_v62, %v226_v63 }
 0x294   :  { %v395_v2 = vadd.f32 %v394_v0, %v222_v59  ;;  %v396_v3 = vpop.f32.mrb[2].mxu0  ;;  %v438_v5 = vpop.f32.mrb[2].mxu1 }
 0x295   :  { %v4312_v6 = vadd.f32 %v438_v5, %v226_v63  ;;  %v398_v7 = vpop.f32.mrb[3].mxu0  ;;  %v3419_v8 = vpop.f32.mrb[3].mxu1  ;;  %v442_v13 = vmul.f32 0.25, %v393_v9  ;;  %v397_v16 = vadd.f32 %v396_v3, %v218_v60  ;;  %v4330_v20 = vpack.c.bf16 %v436_v17, %v436_v17 }
 0x296   :  { %v4314_v10 = vpack.c.bf16 %v395_v2, %v395_v2  ;;  %v399_v11 = vadd.f32 %v398_v7, %v222_v59 }
 0x297   :  { %v4321_v15 = vpack.c.bf16 %v442_v13, %v442_v13  ;;  %v443_v19 = vmul.f32 0.25, %v397_v16  ;;  %v585_v22 = vsel %vm583_vm2, %v4330_v20, 0  ;;  %v4357_v50 = vpack.c.bf16 %v4312_v6, %v4312_v6 }
 0x298   :  { %v467_v12 = vsel %vm462_vm1, %v4314_v10, 0  ;;  %v4319_v14 = vpack.c.bf16 %v399_v11, %v399_v11 }
 0x299   :  { %3421 = vmatpush3.bf16.xpose.msra.mxu1 %v467_v12  ;;  %v4332_v21 = vpack.c.bf16 %v443_v19, %v443_v19  ;;  %v631_v56 = vsel %vm583_vm2, %v4357_v50, 0 }
 0x29a   :  { %3426 = vmatprep.subr.bf16.mxu1 %v4086_v4  ;;  %v513_v18 = vsel %vm462_vm1, %v4319_v14, 0 }
 0x2a0   :  { %3423 = vmatmul.mubr.msk.bf16.vlgmr.msra.gmra.mrb[4].mxu1 %vm462_vm1, %v4321_v15 }
 0x2a1   :  { %3427 = vmatpush3.bf16.xpose.msra.mxu1 %v513_v18  ;;  %3428 = vmatprep.mubr.msk.bf16.mxu1 %vm4088_vm0, %v4086_v4 }
 0x2a2   :  { %3432 = vmatprep.subr.bf16.mxu1 %v4086_v4 }
 0x2a8   :  { %3429 = vmatmul.mubr.msk.bf16.vlgmr.msra.gmra.mrb[8].mxu1 %vm462_vm1, %v4332_v21 }
 0x2a9   :  { %3433 = vmatpush3.bf16.msra.mxu1 %v585_v22  ;;  %3434 = vmatprep.mubr.msk.bf16.mxu1 %vm4088_vm0, %v4086_v4 }
 0x2aa   :  { %3438 = vmatprep.subr.bf16.mxu1 %v4086_v4 }
 0x373   :  { %v503_v23 = vpop.f32.mrb[4].mxu1 }
 0x374   :  { %v3424_v24 = vpop.f32.mrb[5].mxu1  ;;  %v556_v25 = vsel %vm555_vm3, %v503_v23, -inf }
 0x375   :  { %557 = vmax.xlane.f32.xlu0 %v556_v25  ;;  %v506_v26 = vpop.f32.mrb[6].mxu1 }
 0x376   :  { %v3425_v27 = vpop.f32.mrb[7].mxu1 }
 0x37b   :  { %v549_v28 = vpop.f32.mrb[8].mxu1 }
 0x37c   :  { %v3430_v29 = vpop.f32.mrb[9].mxu1  ;;  %v559_v31 = vsel %vm555_vm3, %v549_v28, -inf }
 0x37d   :  { %560 = vmax.xlane.f32.xlu1 %v559_v31  ;;  %v552_v32 = vpop.f32.mrb[10].mxu1 }
 0x37e   :  { %v3431_v33 = vpop.f32.mrb[11].mxu1 }
 0x38e   :  { %725 = vrot.lane.b32.xlu1 %v4319_v14, %s4089_s4 }
 0x402   :  { %v558_v34 = vpop.xlane.xlu0 %557 }
 0x403   :  { %v562_v35 = vsub.f32 %v503_v23, %v558_v34 }
 0x405   :  { %v564_v36 = vmul.f32 1.442695, %v562_v35 }
 0x407   :  { %3815 = vpow2.f32 %v564_v36 }
 0x40a   :  { %v561_v37 = vpop.xlane.xlu1 %560 }
 0x40b   :  { %v563_v38 = vsub.f32 %v549_v28, %v561_v37 }
 0x40d   :  { %v566_v39 = vmul.f32 1.442695, %v563_v38 }
 0x40e   :  { %v726_v45 = vpop.permute.xlu1 %725 }
 0x40f   :  { %3817 = vpow2.f32 %v566_v39  ;;  %v731_v62 = vsel %vm462_vm1, %v726_v45, 0 }
 0x411   :  { %v3816_v40 = vpop.eup %3815 }
 0x412   :  { %v568_v41 = vsel %vm555_vm3, %v3816_v40, 0.0 }
 0x413   :  { %569 = vadd.xlane.f32.xlu0 %v568_v41 }
 0x419   :  { %v3818_v42 = vpop.eup %3817 }
 0x41a   :  { %v571_v43 = vsel %vm555_vm3, %v3818_v42, 0.0 }
 0x41b   :  { %572 = vadd.xlane.f32.xlu1 %v571_v43 }
 0x429   :  { %675 = vrot.lane.b32.xlu0 %v4314_v10, %s4089_s4 }
 0x42c   :  { %673 = vrot.lane.b32.xlu1 %v4321_v15, %s4089_s4 }
 0x430   :  { %723 = vrot.lane.b32.xlu1 %v4332_v21, %s4089_s4 }
 0x4a0   :  { %v570_v44 = vpop.xlane.xlu0 %569 }
 0x4a1   :  { %3819 = vrcp.f32 %v570_v44 }
 0x4a4   :  { %v676_v46 = vpop.permute.xlu0 %675 }
 0x4a5   :  { %v681_v47 = vsel %vm462_vm1, %v676_v46, 0 }
 0x4a6   :  { %3445 = vmatpush3.bf16.xpose.msra.mxu0 %v681_v47 }
 0x4a7   :  { %3456 = vmatprep.subr.bf16.mxu0 %v4086_v4 }
 0x4a8   :  { %v573_v48 = vpop.xlane.xlu1 %572 }
 0x4a9   :  { %3821 = vrcp.f32 %v573_v48 }
 0x4ab   :  { %v3820_v49 = vpop.eup %3819 }
 0x4ac   :  { %v576_v51 = vmul.f32 %v3820_v49, %v3816_v40  ;;  %v674_v52 = vpop.permute.xlu1 %673 }
 0x4ad   :  { %3447 = vmatmul.mubr.msk.bf16.vlgmr.msra.gmra.mrb[4].mxu0 %vm462_vm1, %v674_v52 }
 0x4ae   :  { %v578_v53 = vpack.c.bf16 %v576_v51, %v576_v51  ;;  %3458 = vmatprep.mubr.msk.bf16.mxu0 %vm4088_vm0, %v4086_v4 }
 0x4b0   :  { %3435 = vmatmul.mubr.msk.bf16.vlgmr.msra.gmra.mrb[12].mxu1 %vm555_vm3, %v578_v53  ;;  %v724_v63 = vpop.permute.xlu1 %723 }
 0x4b1   :  { %3439 = vmatpush3.bf16.msra.mxu1 %v631_v56  ;;  %3440 = vmatprep.mubr.msk.bf16.mxu1 %vm4088_vm0, %v4086_v4 }
 0x4b2   :  { %3450 = vmatprep.subr.bf16.mxu1 %v4086_v4 }
 0x4b3   :  { %v3822_v59 = vpop.eup %3821 }
 0x4b4   :  { %v577_v60 = vmul.f32 %v3822_v59, %v3818_v42 }
 0x4b6   :  { %v579_v61 = vpack.c.bf16 %v577_v60, %v577_v60 }
 0x4b8   :  { %3441 = vmatmul.mubr.msk.bf16.vlgmr.msra.gmra.mrb[16].mxu1 %vm555_vm3, %v579_v61 }
 0x4b9   :  { %3452 = vmatprep.mubr.msk.bf16.mxu1 %vm4088_vm0, %v4086_v4 }
 0x4ba   :  { %3451 = vmatpush3.bf16.xpose.msra.mxu1 %v731_v62 }
 0x4bb   :  { %3462 = vmatprep.subr.bf16.mxu1 %v4086_v4 }
 0x4c1   :  { %3453 = vmatmul.mubr.msk.bf16.vlgmr.msra.gmra.mrb[20].mxu1 %vm462_vm1, %v724_v63 }
 0x4c2   :  { %3464 = vmatprep.mubr.msk.bf16.mxu1 %vm4088_vm0, %v4086_v4 }
 0x580   :  { %v717_v0 = vpop.f32.mrb[4].mxu0 }
 0x581   :  { %v3448_v1 = vpop.f32.mrb[5].mxu0  ;;  %v773_v2 = vsel %vm555_vm3, %v717_v0, -inf }
 0x582   :  { %774 = vmax.xlane.f32.xlu0 %v773_v2  ;;  %v720_v3 = vpop.f32.mrb[6].mxu0 }
 0x583   :  { %v4377_v5 = vpop.f32.mrb[12].mxu1  ;;  %v3449_v6 = vpop.f32.mrb[7].mxu0 }
 0x584   :  { %v3436_v7 = vpop.f32.mrb[13].mxu1 }
 0x585   :  { %v624_v8 = vpop.f32.mrb[14].mxu1 }
 0x586   :  { %v3437_v9 = vpop.f32.mrb[15].mxu1 }
 0x58b   :  { %v4379_v11 = vpop.f32.mrb[16].mxu1 }
 0x58c   :  { %v3442_v12 = vpop.f32.mrb[17].mxu1 }
 0x58d   :  { %v670_v13 = vpop.f32.mrb[18].mxu1 }
 0x58e   :  { %v3443_v16 = vpop.f32.mrb[19].mxu1 }
 0x594   :  { %v767_v17 = vpop.f32.mrb[20].mxu1 }
 0x595   :  { %v3454_v18 = vpop.f32.mrb[21].mxu1  ;;  %v776_v19 = vsel %vm555_vm3, %v767_v17, -inf }
 0x596   :  { %777 = vmax.xlane.f32.xlu1 %v776_v19  ;;  %v770_v22 = vpop.f32.mrb[22].mxu1 }
 0x597   :  { %v3455_v23 = vpop.f32.mrb[23].mxu1 }
 0x5a7   :  { %845 = vrot.lane.b32.xlu1 %v4357_v50, %s4089_s4 }
 0x5ab   :  { %895 = vrot.lane.b32.xlu1 %v4314_v10, %s4090_s14 }
 0x5af   :  { %945 = vrot.lane.b32.xlu1 %v4319_v14, %s4090_s14 }
 0x5b3   :  { %943 = vrot.lane.b32.xlu1 %v4332_v21, %s4090_s14 }
 0x60f   :  { %v775_v24 = vpop.xlane.xlu0 %774 }
 0x610   :  { %v779_v25 = vsub.f32 %v717_v0, %v775_v24 }
 0x612   :  { %v781_v26 = vmul.f32 1.442695, %v779_v25 }
 0x614   :  { %3823 = vpow2.f32 %v781_v26 }
 0x61e   :  { %v3824_v27 = vpop.eup %3823 }
 0x61f   :  { %v785_v28 = vsel %vm555_vm3, %v3824_v27, 0.0 }
 0x620   :  { %786 = vadd.xlane.f32.xlu0 %v785_v28 }
 0x623   :  { %v778_v29 = vpop.xlane.xlu1 %777 }
 0x624   :  { %v780_v31 = vsub.f32 %v767_v17, %v778_v29 }
 0x626   :  { %v783_v32 = vmul.f32 1.442695, %v780_v31 }
 0x627   :  { %v846_v33 = vpop.permute.xlu1 %845 }
 0x628   :  { %3825 = vpow2.f32 %v783_v32  ;;  %v851_v34 = vsel %vm583_vm2, %v846_v33, 0 }
 0x629   :  { %3463 = vmatpush3.bf16.msra.mxu1 %v851_v34 }
 0x62a   :  { %3474 = vmatprep.subr.bf16.mxu1 %v4086_v4 }
 0x62b   :  { %v896_v43 = vpop.permute.xlu1 %895 }
 0x62c   :  { %v901_v48 = vsel %vm462_vm1, %v896_v43, 0 }
 0x62f   :  { %v946_v47 = vpop.permute.xlu1 %945 }
 0x630   :  { %v951_v51 = vsel %vm462_vm1, %v946_v47, 0 }
 0x632   :  { %v3826_v35 = vpop.eup %3825 }
 0x633   :  { %v788_v36 = vsel %vm555_vm3, %v3826_v35, 0.0  ;;  %v944_v53 = vpop.permute.xlu1 %943 }
 0x634   :  { %789 = vadd.xlane.f32.xlu0 %v788_v36 }
 0x64a   :  { %797 = vrot.lane.b32.xlu0 %v4330_v20, %s4089_s4 }
 0x64e   :  { %893 = vrot.lane.b32.xlu0 %v4321_v15, %s4090_s14 }
 0x6ad   :  { %v787_v37 = vpop.xlane.xlu0 %786 }
 0x6ae   :  { %3827 = vrcp.f32 %v787_v37 }
 0x6b8   :  { %v3828_v38 = vpop.eup %3827 }
 0x6b9   :  { %v793_v40 = vmul.f32 %v3828_v38, %v3824_v27 }
 0x6bb   :  { %v795_v44 = vpack.c.bf16 %v793_v40, %v793_v40 }
 0x6c1   :  { %v790_v39 = vpop.xlane.xlu0 %789 }
 0x6c2   :  { %3829 = vrcp.f32 %v790_v39 }
 0x6c5   :  { %v798_v41 = vpop.permute.xlu0 %797 }
 0x6c6   :  { %v803_v42 = vsel %vm583_vm2, %v798_v41, 0 }
 0x6c7   :  { %3457 = vmatpush3.bf16.msra.mxu0 %v803_v42 }
 0x6c8   :  { %3468 = vmatprep.subr.bf16.mxu0 %v4086_v4 }
 0x6c9   :  { %v894_v52 = vpop.permute.xlu0 %893 }
 0x6ca   :  { %3459 = vmatmul.mubr.msk.bf16.vlgmr.msra.gmra.mrb[8].mxu0 %vm555_vm3, %v795_v44 }
 0x6cb   :  { %3470 = vmatprep.mubr.msk.bf16.mxu0 %vm4088_vm0, %v4086_v4 }
 0x6cc   :  { %v3830_v45 = vpop.eup %3829 }
 0x6cd   :  { %v794_v46 = vmul.f32 %v3830_v45, %v3826_v35 }
 0x6cf   :  { %v796_v49 = vpack.c.bf16 %v794_v46, %v794_v46 }
 0x6d0   :  { %3469 = vmatpush3.bf16.xpose.msra.mxu0 %v901_v48 }
 0x6d1   :  { %3465 = vmatmul.mubr.msk.bf16.vlgmr.msra.gmra.mrb[24].mxu1 %vm555_vm3, %v796_v49  ;;  %3480 = vmatprep.subr.bf16.mxu0 %v4086_v4 }
 0x6d2   :  { %3475 = vmatpush3.bf16.xpose.msra.mxu1 %v951_v51  ;;  %3476 = vmatprep.mubr.msk.bf16.mxu1 %vm4088_vm0, %v4086_v4 }
 0x6d3   :  { %3486 = vmatprep.subr.bf16.mxu1 %v4086_v4 }
 0x6d7   :  { %3471 = vmatmul.mubr.msk.bf16.vlgmr.msra.gmra.mrb[12].mxu0 %vm462_vm1, %v894_v52 }
 0x6d8   :  { %3482 = vmatprep.mubr.msk.bf16.mxu0 %vm4088_vm0, %v4086_v4 }
 0x6d9   :  { %3477 = vmatmul.mubr.msk.bf16.vlgmr.msra.gmra.mrb[28].mxu1 %vm462_vm1, %v944_v53 }
 0x6da   :  { %3488 = vmatprep.mubr.msk.bf16.mxu1 %vm4088_vm0, %v4086_v4 }
 0x79d   :  { %v4416_v56 = vpop.f32.mrb[8].mxu0 }
 0x79e   :  { %v3460_v59 = vpop.f32.mrb[9].mxu0 }
 0x79f   :  { %v842_v60 = vpop.f32.mrb[10].mxu0 }
 0x7a0   :  { %v3461_v61 = vpop.f32.mrb[11].mxu0 }
 0x7a4   :  { %v4418_v62 = vpop.f32.mrb[24].mxu1 }
 0x7a5   :  { %v3656_v63 = vpack.i.bf16 %v4418_v62, %v4416_v56  ;;  %v3466_v0 = vpop.f32.mrb[25].mxu1 }
 0x7a6   :  { %v890_v1 = vpop.f32.mrb[26].mxu1 }
 0x7a7   :  { %v3467_v2 = vpop.f32.mrb[27].mxu1 }
 0x7aa   :  { %v937_v3 = vpop.f32.mrb[12].mxu0 }
 0x7ab   :  { %v3472_v6 = vpop.f32.mrb[13].mxu0  ;;  %v993_v7 = vsel %vm555_vm3, %v937_v3, -inf }
 0x7ac   :  { %994 = vmax.xlane.f32.xlu0 %v993_v7  ;;  %v940_v8 = vpop.f32.mrb[14].mxu0  ;;  %v987_v9 = vpop.f32.mrb[28].mxu1 }
 0x7ad   :  { %v3473_v12 = vpop.f32.mrb[15].mxu0  ;;  %v3478_v13 = vpop.f32.mrb[29].mxu1  ;;  %v996_v16 = vsel %vm555_vm3, %v987_v9, -inf }
 0x7ae   :  { %997 = vmax.xlane.f32.xlu1 %v996_v16  ;;  %v990_v17 = vpop.f32.mrb[30].mxu1 }
 0x7af   :  { %v3479_v18 = vpop.f32.mrb[31].mxu1 }
 0x7bf   :  { %1065 = vrot.lane.b32.xlu1 %v4357_v50, %s4090_s14 }
 0x7c3   :  { %1115 = vrot.lane.b32.xlu1 %v4314_v10, %s4091_s15 }
 0x7c7   :  { %1165 = vrot.lane.b32.xlu1 %v4319_v14, %s4091_s15 }
 0x7cb   :  { %1163 = vrot.lane.b32.xlu1 %v4332_v21, %s4091_s15 }
 0x839   :  { %v995_v19 = vpop.xlane.xlu0 %994 }
 0x83a   :  { %v999_v22 = vsub.f32 %v937_v3, %v995_v19 }
 0x83b   :  { %v998_v23 = vpop.xlane.xlu1 %997 }
 0x83c   :  { %v1001_v24 = vmul.f32 1.442695, %v999_v22  ;;  %v1000_v25 = vsub.f32 %v987_v9, %v998_v23 }
 0x83e   :  { %3831 = vpow2.f32 %v1001_v24  ;;  %v1003_v26 = vmul.f32 1.442695, %v1000_v25 }
 0x83f   :  { %v1066_v27 = vpop.permute.xlu1 %1065 }
 0x840   :  { %3833 = vpow2.f32 %v1003_v26  ;;  %v1071_v28 = vsel %vm583_vm2, %v1066_v27, 0 }
 0x841   :  { %3487 = vmatpush3.bf16.msra.mxu1 %v1071_v28 }
 0x842   :  { %3498 = vmatprep.subr.bf16.mxu1 %v4086_v4 }
 0x843   :  { %v1116_v39 = vpop.permute.xlu1 %1115 }
 0x844   :  { %v1121_v45 = vsel %vm462_vm1, %v1116_v39, 0 }
 0x847   :  { %v1166_v44 = vpop.permute.xlu1 %1165 }
 0x848   :  { %v3832_v29 = vpop.eup %3831  ;;  %v1171_v47 = vsel %vm462_vm1, %v1166_v44, 0 }
 0x849   :  { %v1005_v31 = vsel %vm555_vm3, %v3832_v29, 0.0 }
 0x84a   :  { %v3834_v32 = vpop.eup %3833  ;;  %1006 = vadd.xlane.f32.xlu0 %v1005_v31 }
 0x84b   :  { %v1008_v33 = vsel %vm555_vm3, %v3834_v32, 0.0  ;;  %v1164_v49 = vpop.permute.xlu1 %1163 }
 0x84e   :  { %1009 = vadd.xlane.f32.xlu0 %v1008_v33 }
 0x864   :  { %1017 = vrot.lane.b32.xlu0 %v4330_v20, %s4090_s14 }
 0x868   :  { %1113 = vrot.lane.b32.xlu0 %v4321_v15, %s4091_s15 }
 0x8d7   :  { %v1007_v34 = vpop.xlane.xlu0 %1006 }
 0x8d8   :  { %3835 = vrcp.f32 %v1007_v34 }
 0x8db   :  { %v1010_v35 = vpop.xlane.xlu0 %1009 }
 0x8dc   :  { %3837 = vrcp.f32 %v1010_v35 }
 0x8df   :  { %v1018_v36 = vpop.permute.xlu0 %1017 }
 0x8e0   :  { %v1023_v37 = vsel %vm583_vm2, %v1018_v36, 0 }
 0x8e1   :  { %3481 = vmatpush3.bf16.msra.mxu0 %v1023_v37 }
 0x8e2   :  { %v3836_v38 = vpop.eup %3835  ;;  %3492 = vmatprep.subr.bf16.mxu0 %v4086_v4 }
 0x8e3   :  { %v1013_v40 = vmul.f32 %v3836_v38, %v3832_v29  ;;  %v1114_v48 = vpop.permute.xlu0 %1113 }
 0x8e5   :  { %v1015_v41 = vpack.c.bf16 %v1013_v40, %v1013_v40 }
 0x8e6   :  { %v3838_v42 = vpop.eup %3837 }
 0x8e7   :  { %v1014_v43 = vmul.f32 %v3838_v42, %v3834_v32  ;;  %3483 = vmatmul.mubr.msk.bf16.vlgmr.msra.gmra.mrb[16].mxu0 %vm555_vm3, %v1015_v41 }
 0x8e8   :  { %3494 = vmatprep.mubr.msk.bf16.mxu0 %vm4088_vm0, %v4086_v4 }
 0x8e9   :  { %v1016_v46 = vpack.c.bf16 %v1014_v43, %v1014_v43 }
 0x8ea   :  { %3493 = vmatpush3.bf16.xpose.msra.mxu0 %v1121_v45 }
 0x8eb   :  { %3489 = vmatmul.mubr.msk.bf16.vlgmr.msra.gmra.mrb[32].mxu1 %vm555_vm3, %v1016_v46  ;;  %3504 = vmatprep.subr.bf16.mxu0 %v4086_v4 }
 0x8ec   :  { %3499 = vmatpush3.bf16.xpose.msra.mxu1 %v1171_v47  ;;  %3500 = vmatprep.mubr.msk.bf16.mxu1 %vm4088_vm0, %v4086_v4 }
 0x8ed   :  { %3510 = vmatprep.subr.bf16.mxu1 %v4086_v4 }
 0x8f1   :  { %3495 = vmatmul.mubr.msk.bf16.vlgmr.msra.gmra.mrb[20].mxu0 %vm462_vm1, %v1114_v48 }
 0x8f2   :  { %3506 = vmatprep.mubr.msk.bf16.mxu0 %vm4088_vm0, %v4086_v4 }
 0x8f3   :  { %3501 = vmatmul.mubr.msk.bf16.vlgmr.msra.gmra.mrb[36].mxu1 %vm462_vm1, %v1164_v49 }
 0x8f4   :  { %3512 = vmatprep.mubr.msk.bf16.mxu1 %vm4088_vm0, %v4086_v4 }
 0x9ba   :  { %v4458_v51 = vpop.f32.mrb[16].mxu0 }
 0x9bb   :  { %v3484_v52 = vpop.f32.mrb[17].mxu0 }
 0x9bc   :  { %v1062_v53 = vpop.f32.mrb[18].mxu0 }
 0x9bd   :  { %v3485_v59 = vpop.f32.mrb[19].mxu0 }
 0x9be   :  { %v4460_v60 = vpop.f32.mrb[32].mxu1 }
 0x9bf   :  { %v3661_v61 = vpack.i.bf16 %v4460_v60, %v4458_v51  ;;  %v3490_v0 = vpop.f32.mrb[33].mxu1 }
 0x9c0   :  { %v1110_v1 = vpop.f32.mrb[34].mxu1 }
 0x9c1   :  { %v3491_v2 = vpop.f32.mrb[35].mxu1 }
 0x9c4   :  { %v1157_v3 = vpop.f32.mrb[20].mxu0 }
 0x9c5   :  { %v3496_v6 = vpop.f32.mrb[21].mxu0  ;;  %v1213_v7 = vsel %vm555_vm3, %v1157_v3, -inf }
 0x9c6   :  { %1214 = vmax.xlane.f32.xlu0 %v1213_v7  ;;  %v1160_v8 = vpop.f32.mrb[22].mxu0  ;;  %v1207_v9 = vpop.f32.mrb[36].mxu1 }
 0x9c7   :  { %v3497_v12 = vpop.f32.mrb[23].mxu0  ;;  %v3502_v13 = vpop.f32.mrb[37].mxu1  ;;  %v1216_v16 = vsel %vm555_vm3, %v1207_v9, -inf }
 0x9c8   :  { %1217 = vmax.xlane.f32.xlu1 %v1216_v16  ;;  %v1210_v17 = vpop.f32.mrb[38].mxu1 }
 0x9c9   :  { %v3503_v18 = vpop.f32.mrb[39].mxu1 }
 0x9d9   :  { %1285 = vrot.lane.b32.xlu1 %v4357_v50, %s4091_s15 }
 0x9dd   :  { %1335 = vrot.lane.b32.xlu1 %v4314_v10, %s4083_s2 }
 0x9e1   :  { %1385 = vrot.lane.b32.xlu1 %v4319_v14, %s4083_s2 }
 0x9e5   :  { %1383 = vrot.lane.b32.xlu1 %v4332_v21, %s4083_s2 }
 0xa53   :  { %v1215_v19 = vpop.xlane.xlu0 %1214 }
 0xa54   :  { %v1219_v22 = vsub.f32 %v1157_v3, %v1215_v19 }
 0xa55   :  { %v1218_v23 = vpop.xlane.xlu1 %1217 }
 0xa56   :  { %v1221_v24 = vmul.f32 1.442695, %v1219_v22  ;;  %v1220_v25 = vsub.f32 %v1207_v9, %v1218_v23 }
 0xa58   :  { %3839 = vpow2.f32 %v1221_v24  ;;  %v1223_v26 = vmul.f32 1.442695, %v1220_v25 }
 0xa59   :  { %v1286_v27 = vpop.permute.xlu1 %1285 }
 0xa5a   :  { %3841 = vpow2.f32 %v1223_v26  ;;  %v1291_v28 = vsel %vm583_vm2, %v1286_v27, 0 }
 0xa5b   :  { %3511 = vmatpush3.bf16.msra.mxu1 %v1291_v28 }
 0xa5c   :  { %3522 = vmatprep.subr.bf16.mxu1 %v4086_v4 }
 0xa5d   :  { %v1336_v39 = vpop.permute.xlu1 %1335 }
 0xa5e   :  { %v1341_v45 = vsel %vm462_vm1, %v1336_v39, 0 }
 0xa61   :  { %v1386_v44 = vpop.permute.xlu1 %1385 }
 0xa62   :  { %v3840_v29 = vpop.eup %3839  ;;  %v1391_v47 = vsel %vm462_vm1, %v1386_v44, 0 }
 0xa63   :  { %v1225_v31 = vsel %vm555_vm3, %v3840_v29, 0.0 }
 0xa64   :  { %v3842_v32 = vpop.eup %3841  ;;  %1226 = vadd.xlane.f32.xlu0 %v1225_v31 }
 0xa65   :  { %v1228_v33 = vsel %vm555_vm3, %v3842_v32, 0.0  ;;  %v1384_v49 = vpop.permute.xlu1 %1383 }
 0xa68   :  { %1229 = vadd.xlane.f32.xlu0 %v1228_v33 }
 0xa7e   :  { %1237 = vrot.lane.b32.xlu0 %v4330_v20, %s4091_s15 }
 0xa82   :  { %1333 = vrot.lane.b32.xlu0 %v4321_v15, %s4083_s2 }
 0xaf1   :  { %v1227_v34 = vpop.xlane.xlu0 %1226 }
 0xaf2   :  { %3843 = vrcp.f32 %v1227_v34 }
 0xaf5   :  { %v1230_v35 = vpop.xlane.xlu0 %1229 }
 0xaf6   :  { %3845 = vrcp.f32 %v1230_v35 }
 0xaf9   :  { %v1238_v36 = vpop.permute.xlu0 %1237 }
 0xafa   :  { %v1243_v37 = vsel %vm583_vm2, %v1238_v36, 0 }
 0xafb   :  { %3505 = vmatpush3.bf16.msra.mxu0 %v1243_v37 }
 0xafc   :  { %v3844_v38 = vpop.eup %3843  ;;  %3516 = vmatprep.subr.bf16.mxu0 %v4086_v4 }
 0xafd   :  { %v1233_v40 = vmul.f32 %v3844_v38, %v3840_v29  ;;  %v1334_v48 = vpop.permute.xlu0 %1333 }
 0xaff   :  { %v1235_v41 = vpack.c.bf16 %v1233_v40, %v1233_v40 }
 0xb00   :  { %v3846_v42 = vpop.eup %3845 }
 0xb01   :  { %v1234_v43 = vmul.f32 %v3846_v42, %v3842_v32  ;;  %3507 = vmatmul.mubr.msk.bf16.vlgmr.msra.gmra.mrb[24].mxu0 %vm555_vm3, %v1235_v41 }
 0xb02   :  { %3518 = vmatprep.mubr.msk.bf16.mxu0 %vm4088_vm0, %v4086_v4 }
 0xb03   :  { %v1236_v46 = vpack.c.bf16 %v1234_v43, %v1234_v43 }
 0xb04   :  { %3517 = vmatpush3.bf16.xpose.msra.mxu0 %v1341_v45 }
 0xb05   :  { %3513 = vmatmul.mubr.msk.bf16.vlgmr.msra.gmra.mrb[40].mxu1 %vm555_vm3, %v1236_v46  ;;  %3528 = vmatprep.subr.bf16.mxu0 %v4086_v4 }
 0xb06   :  { %3523 = vmatpush3.bf16.xpose.msra.mxu1 %v1391_v47  ;;  %3524 = vmatprep.mubr.msk.bf16.mxu1 %vm4088_vm0, %v4086_v4 }
 0xb07   :  { %3534 = vmatprep.subr.bf16.mxu1 %v4086_v4 }
 0xb0b   :  { %3519 = vmatmul.mubr.msk.bf16.vlgmr.msra.gmra.mrb[28].mxu0 %vm462_vm1, %v1334_v48 }
 0xb0c   :  { %3530 = vmatprep.mubr.msk.bf16.mxu0 %vm4088_vm0, %v4086_v4 }
 0xb0d   :  { %3525 = vmatmul.mubr.msk.bf16.vlgmr.msra.gmra.mrb[44].mxu1 %vm462_vm1, %v1384_v49 }
 0xb0e   :  { %3536 = vmatprep.mubr.msk.bf16.mxu1 %vm4088_vm0, %v4086_v4 }
 0xbd4   :  { %v4500_v52 = vpop.f32.mrb[24].mxu0 }
 0xbd5   :  { %v3508_v53 = vpop.f32.mrb[25].mxu0 }
 0xbd6   :  { %v1282_v59 = vpop.f32.mrb[26].mxu0 }
 0xbd7   :  { %v3509_v0 = vpop.f32.mrb[27].mxu0 }
 0xbd8   :  { %v4502_v1 = vpop.f32.mrb[40].mxu1 }
 0xbd9   :  { %v3666_v2 = vpack.i.bf16 %v4502_v1, %v4500_v52  ;;  %v3514_v3 = vpop.f32.mrb[41].mxu1 }
 0xbda   :  { %v1330_v6 = vpop.f32.mrb[42].mxu1 }
 0xbdb   :  { %v3515_v7 = vpop.f32.mrb[43].mxu1 }
 0xbde   :  { %v1377_v8 = vpop.f32.mrb[28].mxu0 }
 0xbdf   :  { %v3520_v9 = vpop.f32.mrb[29].mxu0  ;;  %v1433_v12 = vsel %vm555_vm3, %v1377_v8, -inf }
 0xbe0   :  { %1434 = vmax.xlane.f32.xlu0 %v1433_v12  ;;  %v1380_v13 = vpop.f32.mrb[30].mxu0  ;;  %v1427_v16 = vpop.f32.mrb[44].mxu1 }
 0xbe1   :  { %v3521_v17 = vpop.f32.mrb[31].mxu0  ;;  %v3526_v18 = vpop.f32.mrb[45].mxu1  ;;  %v1436_v19 = vsel %vm555_vm3, %v1427_v16, -inf }
 0xbe2   :  { %1437 = vmax.xlane.f32.xlu1 %v1436_v19  ;;  %v1430_v22 = vpop.f32.mrb[46].mxu1 }
 0xbe3   :  { %v3527_v23 = vpop.f32.mrb[47].mxu1 }
 0xbf3   :  { %1505 = vrot.lane.b32.xlu1 %v4357_v50, %s4083_s2 }
 0xbf7   :  { %1555 = vrot.lane.b32.xlu1 %v4314_v10, %s4092_s26 }
 0xbfb   :  { %1605 = vrot.lane.b32.xlu1 %v4319_v14, %s4092_s26 }
 0xbff   :  { %1603 = vrot.lane.b32.xlu1 %v4332_v21, %s4092_s26 }
 0xc6d   :  { %v1435_v24 = vpop.xlane.xlu0 %1434 }
 0xc6e   :  { %v1439_v25 = vsub.f32 %v1377_v8, %v1435_v24 }
 0xc6f   :  { %v1438_v26 = vpop.xlane.xlu1 %1437 }
 0xc70   :  { %v1441_v27 = vmul.f32 1.442695, %v1439_v25  ;;  %v1440_v28 = vsub.f32 %v1427_v16, %v1438_v26 }
 0xc72   :  { %3847 = vpow2.f32 %v1441_v27  ;;  %v1443_v29 = vmul.f32 1.442695, %v1440_v28 }
 0xc73   :  { %v1506_v31 = vpop.permute.xlu1 %1505 }
 0xc74   :  { %3849 = vpow2.f32 %v1443_v29  ;;  %v1511_v32 = vsel %vm583_vm2, %v1506_v31, 0 }
 0xc75   :  { %3535 = vmatpush3.bf16.msra.mxu1 %v1511_v32 }
 0xc76   :  { %3546 = vmatprep.subr.bf16.mxu1 %v4086_v4 }
 0xc77   :  { %v1556_v42 = vpop.permute.xlu1 %1555 }
 0xc78   :  { %v1561_v48 = vsel %vm462_vm1, %v1556_v42, 0 }
 0xc7b   :  { %v1606_v47 = vpop.permute.xlu1 %1605 }
 0xc7c   :  { %v3848_v33 = vpop.eup %3847  ;;  %v1611_v53 = vsel %vm462_vm1, %v1606_v47, 0 }
 0xc7d   :  { %v1445_v34 = vsel %vm555_vm3, %v3848_v33, 0.0 }
 0xc7e   :  { %v3850_v35 = vpop.eup %3849  ;;  %1446 = vadd.xlane.f32.xlu0 %v1445_v34 }
 0xc7f   :  { %v1448_v36 = vsel %vm555_vm3, %v3850_v35, 0.0  ;;  %v1604_v0 = vpop.permute.xlu1 %1603 }
 0xc82   :  { %1449 = vadd.xlane.f32.xlu0 %v1448_v36 }
 0xc98   :  { %1457 = vrot.lane.b32.xlu0 %v4330_v20, %s4083_s2 }
 0xc9c   :  { %1553 = vrot.lane.b32.xlu0 %v4321_v15, %s4092_s26 }
 0xd0b   :  { %v1447_v37 = vpop.xlane.xlu0 %1446 }
 0xd0c   :  { %3851 = vrcp.f32 %v1447_v37 }
 0xd0f   :  { %v1450_v38 = vpop.xlane.xlu0 %1449 }
 0xd10   :  { %3853 = vrcp.f32 %v1450_v38 }
 0xd13   :  { %v1458_v39 = vpop.permute.xlu0 %1457 }
 0xd14   :  { %v1463_v40 = vsel %vm583_vm2, %v1458_v39, 0 }
 0xd15   :  { %3529 = vmatpush3.bf16.msra.mxu0 %v1463_v40 }
 0xd16   :  { %v3852_v41 = vpop.eup %3851  ;;  %3540 = vmatprep.subr.bf16.mxu0 %v4086_v4 }
 0xd17   :  { %v1453_v43 = vmul.f32 %v3852_v41, %v3848_v33  ;;  %v1554_v59 = vpop.permute.xlu0 %1553 }
 0xd19   :  { %v1455_v44 = vpack.c.bf16 %v1453_v43, %v1453_v43 }
 0xd1a   :  { %v3854_v45 = vpop.eup %3853 }
 0xd1b   :  { %v1454_v46 = vmul.f32 %v3854_v45, %v3850_v35  ;;  %3531 = vmatmul.mubr.msk.bf16.vlgmr.msra.gmra.mrb[32].mxu0 %vm555_vm3, %v1455_v44 }
 0xd1c   :  { %3542 = vmatprep.mubr.msk.bf16.mxu0 %vm4088_vm0, %v4086_v4 }
 0xd1d   :  { %v1456_v49 = vpack.c.bf16 %v1454_v46, %v1454_v46 }
 0xd1e   :  { %3541 = vmatpush3.bf16.xpose.msra.mxu0 %v1561_v48 }
 0xd1f   :  { %3537 = vmatmul.mubr.msk.bf16.vlgmr.msra.gmra.mrb[48].mxu1 %vm555_vm3, %v1456_v49  ;;  %3552 = vmatprep.subr.bf16.mxu0 %v4086_v4 }
 0xd20   :  { %3547 = vmatpush3.bf16.xpose.msra.mxu1 %v1611_v53  ;;  %3548 = vmatprep.mubr.msk.bf16.mxu1 %vm4088_vm0, %v4086_v4 }
 0xd21   :  { %3558 = vmatprep.subr.bf16.mxu1 %v4086_v4 }
 0xd25   :  { %3543 = vmatmul.mubr.msk.bf16.vlgmr.msra.gmra.mrb[36].mxu0 %vm462_vm1, %v1554_v59 }
 0xd26   :  { %3554 = vmatprep.mubr.msk.bf16.mxu0 %vm4088_vm0, %v4086_v4 }
 0xd27   :  { %3549 = vmatmul.mubr.msk.bf16.vlgmr.msra.gmra.mrb[52].mxu1 %vm462_vm1, %v1604_v0 }
 0xd28   :  { %3560 = vmatprep.mubr.msk.bf16.mxu1 %vm4088_vm0, %v4086_v4 }
 0xdee   :  { %v4542_v3 = vpop.f32.mrb[32].mxu0 }
 0xdef   :  { %v3532_v6 = vpop.f32.mrb[33].mxu0 }
 0xdf0   :  { %v1502_v7 = vpop.f32.mrb[34].mxu0 }
 0xdf1   :  { %v3533_v8 = vpop.f32.mrb[35].mxu0 }
 0xdf2   :  { %v4544_v9 = vpop.f32.mrb[48].mxu1 }
 0xdf3   :  { %v3671_v12 = vpack.i.bf16 %v4544_v9, %v4542_v3  ;;  %v3538_v13 = vpop.f32.mrb[49].mxu1 }
 0xdf4   :  { %v1550_v16 = vpop.f32.mrb[50].mxu1 }
 0xdf5   :  { %v3539_v17 = vpop.f32.mrb[51].mxu1 }
 0xdf8   :  { %v1597_v18 = vpop.f32.mrb[36].mxu0 }
 0xdf9   :  { %v3544_v19 = vpop.f32.mrb[37].mxu0  ;;  %v1653_v22 = vsel %vm555_vm3, %v1597_v18, -inf }
 0xdfa   :  { %1654 = vmax.xlane.f32.xlu0 %v1653_v22  ;;  %v1600_v23 = vpop.f32.mrb[38].mxu0  ;;  %v1647_v24 = vpop.f32.mrb[52].mxu1 }
 0xdfb   :  { %v3545_v25 = vpop.f32.mrb[39].mxu0  ;;  %v3550_v26 = vpop.f32.mrb[53].mxu1  ;;  %v1656_v27 = vsel %vm555_vm3, %v1647_v24, -inf }
 0xdfc   :  { %1657 = vmax.xlane.f32.xlu1 %v1656_v27  ;;  %v1650_v28 = vpop.f32.mrb[54].mxu1 }
 0xdfd   :  { %v3551_v29 = vpop.f32.mrb[55].mxu1 }
 0xe0d   :  { %1725 = vrot.lane.b32.xlu1 %v4357_v50, %s4092_s26 }
 0xe11   :  { %1775 = vrot.lane.b32.xlu1 %v4314_v10, %s4093_s29 }
 0xe15   :  { %1825 = vrot.lane.b32.xlu1 %v4319_v14, %s4093_s29 }
 0xe19   :  { %1823 = vrot.lane.b32.xlu1 %v4332_v21, %s4093_s29 }
 0xe87   :  { %v1655_v31 = vpop.xlane.xlu0 %1654 }
 0xe88   :  { %v1659_v32 = vsub.f32 %v1597_v18, %v1655_v31 }
 0xe89   :  { %v1658_v33 = vpop.xlane.xlu1 %1657 }
 0xe8a   :  { %v1661_v34 = vmul.f32 1.442695, %v1659_v32  ;;  %v1660_v35 = vsub.f32 %v1647_v24, %v1658_v33 }
 0xe8c   :  { %3855 = vpow2.f32 %v1661_v34  ;;  %v1663_v36 = vmul.f32 1.442695, %v1660_v35 }
 0xe8d   :  { %v1726_v37 = vpop.permute.xlu1 %1725 }
 0xe8e   :  { %3857 = vpow2.f32 %v1663_v36  ;;  %v1731_v38 = vsel %vm583_vm2, %v1726_v37, 0 }
 0xe8f   :  { %3559 = vmatpush3.bf16.msra.mxu1 %v1731_v38 }
 0xe90   :  { %3570 = vmatprep.subr.bf16.mxu1 %v4086_v4 }
 0xe91   :  { %v1776_v48 = vpop.permute.xlu1 %1775 }
 0xe92   :  { %v1781_v7 = vsel %vm462_vm1, %v1776_v48, 0 }
 0xe95   :  { %v1826_v6 = vpop.permute.xlu1 %1825 }
 0xe96   :  { %v3856_v39 = vpop.eup %3855  ;;  %v1831_v13 = vsel %vm462_vm1, %v1826_v6, 0 }
 0xe97   :  { %v1665_v40 = vsel %vm555_vm3, %v3856_v39, 0.0 }
 0xe98   :  { %v3858_v41 = vpop.eup %3857  ;;  %1666 = vadd.xlane.f32.xlu0 %v1665_v40 }
 0xe99   :  { %v1668_v42 = vsel %vm555_vm3, %v3858_v41, 0.0  ;;  %v1824_v17 = vpop.permute.xlu1 %1823 }
 0xe9c   :  { %1669 = vadd.xlane.f32.xlu0 %v1668_v42 }
 0xeb2   :  { %1677 = vrot.lane.b32.xlu0 %v4330_v20, %s4092_s26 }
 0xeb6   :  { %1773 = vrot.lane.b32.xlu0 %v4321_v15, %s4093_s29 }
 0xf25   :  { %v1667_v43 = vpop.xlane.xlu0 %1666 }
 0xf26   :  { %3859 = vrcp.f32 %v1667_v43 }
 0xf29   :  { %v1670_v44 = vpop.xlane.xlu0 %1669 }
 0xf2a   :  { %3861 = vrcp.f32 %v1670_v44 }
 0xf2d   :  { %v1678_v45 = vpop.permute.xlu0 %1677 }
 0xf2e   :  { %v1683_v46 = vsel %vm583_vm2, %v1678_v45, 0 }
 0xf2f   :  { %3553 = vmatpush3.bf16.msra.mxu0 %v1683_v46 }
 0xf30   :  { %v3860_v47 = vpop.eup %3859  ;;  %3564 = vmatprep.subr.bf16.mxu0 %v4086_v4 }
 0xf31   :  { %v1673_v49 = vmul.f32 %v3860_v47, %v3856_v39  ;;  %v1774_v16 = vpop.permute.xlu0 %1773 }
 0xf33   :  { %v1675_v53 = vpack.c.bf16 %v1673_v49, %v1673_v49 }
 0xf34   :  { %v3862_v59 = vpop.eup %3861 }
 0xf35   :  { %v1674_v0 = vmul.f32 %v3862_v59, %v3858_v41  ;;  %3555 = vmatmul.mubr.msk.bf16.vlgmr.msra.gmra.mrb[40].mxu0 %vm555_vm3, %v1675_v53 }
 0xf36   :  { %3566 = vmatprep.mubr.msk.bf16.mxu0 %vm4088_vm0, %v4086_v4 }
 0xf37   :  { %v1676_v8 = vpack.c.bf16 %v1674_v0, %v1674_v0 }
 0xf38   :  { %3565 = vmatpush3.bf16.xpose.msra.mxu0 %v1781_v7 }
 0xf39   :  { %3561 = vmatmul.mubr.msk.bf16.vlgmr.msra.gmra.mrb[56].mxu1 %vm555_vm3, %v1676_v8  ;;  %3576 = vmatprep.subr.bf16.mxu0 %v4086_v4 }
 0xf3a   :  { %3571 = vmatpush3.bf16.xpose.msra.mxu1 %v1831_v13  ;;  %3572 = vmatprep.mubr.msk.bf16.mxu1 %vm4088_vm0, %v4086_v4 }
 0xf3b   :  { %3582 = vmatprep.subr.bf16.mxu1 %v4086_v4 }
 0xf3f   :  { %3567 = vmatmul.mubr.msk.bf16.vlgmr.msra.gmra.mrb[44].mxu0 %vm462_vm1, %v1774_v16 }
 0xf40   :  { %3578 = vmatprep.mubr.msk.bf16.mxu0 %vm4088_vm0, %v4086_v4 }
 0xf41   :  { %3573 = vmatmul.mubr.msk.bf16.vlgmr.msra.gmra.mrb[60].mxu1 %vm462_vm1, %v1824_v17 }
 0xf42   :  { %3584 = vmatprep.mubr.msk.bf16.mxu1 %vm4088_vm0, %v4086_v4 }
0x1008   :  { %v4584_v18 = vpop.f32.mrb[40].mxu0 }
0x1009   :  { %v3556_v19 = vpop.f32.mrb[41].mxu0 }
0x100a   :  { %v1722_v22 = vpop.f32.mrb[42].mxu0 }
0x100b   :  { %v3557_v23 = vpop.f32.mrb[43].mxu0 }
0x100c   :  { %v4586_v24 = vpop.f32.mrb[56].mxu1 }
0x100d   :  { %v3676_v25 = vpack.i.bf16 %v4586_v24, %v4584_v18  ;;  %v3562_v26 = vpop.f32.mrb[57].mxu1  ;;  %v3723_v18 = vld [vmem:[#allocation10] sm:$0xff]   ;;  %v3724_v24 = vld [vmem:[#allocation10 + $0x8] sm:$0xff]  }
0x100e   :  { %v1770_v27 = vpop.f32.mrb[58].mxu1 }
0x100f   :  { %v3563_v28 = vpop.f32.mrb[59].mxu1 }
0x1012   :  { %v1817_v29 = vpop.f32.mrb[44].mxu0 }
0x1013   :  { %v3568_v31 = vpop.f32.mrb[45].mxu0  ;;  %v1873_v32 = vsel %vm555_vm3, %v1817_v29, -inf }
0x1014   :  { %1874 = vmax.xlane.f32.xlu0 %v1873_v32  ;;  %v1820_v33 = vpop.f32.mrb[46].mxu0  ;;  %v1867_v34 = vpop.f32.mrb[60].mxu1 }
0x1015   :  { %v3569_v35 = vpop.f32.mrb[47].mxu0  ;;  %v3574_v36 = vpop.f32.mrb[61].mxu1  ;;  %v1876_v37 = vsel %vm555_vm3, %v1867_v34, -inf }
0x1016   :  { %1877 = vmax.xlane.f32.xlu1 %v1876_v37  ;;  %v1870_v38 = vpop.f32.mrb[62].mxu1 }
0x1017   :  { %v3575_v39 = vpop.f32.mrb[63].mxu1 }
0x1027   :  { %1945 = vrot.lane.b32.xlu1 %v4357_v50, %s4093_s29 }
0x102b   :  { %1995 = vrot.lane.b32.xlu1 %v4314_v10, %s4077_s28 }
0x102f   :  { %2045 = vrot.lane.b32.xlu1 %v4319_v14, %s4077_s28 }
0x1033   :  { %2043 = vrot.lane.b32.xlu1 %v4332_v21, %s4077_s28 }
0x10a1   :  { %v1875_v40 = vpop.xlane.xlu0 %1874 }
0x10a2   :  { %v1879_v41 = vsub.f32 %v1817_v29, %v1875_v40 }
0x10a3   :  { %v1878_v42 = vpop.xlane.xlu1 %1877 }
0x10a4   :  { %v1881_v43 = vmul.f32 1.442695, %v1879_v41  ;;  %v1880_v44 = vsub.f32 %v1867_v34, %v1878_v42 }
0x10a6   :  { %3863 = vpow2.f32 %v1881_v43  ;;  %v1883_v45 = vmul.f32 1.442695, %v1880_v44 }
0x10a7   :  { %v1946_v46 = vpop.permute.xlu1 %1945 }
0x10a8   :  { %3865 = vpow2.f32 %v1883_v45  ;;  %v1951_v47 = vsel %vm583_vm2, %v1946_v46, 0 }
0x10a9   :  { %3583 = vmatpush3.bf16.msra.mxu1 %v1951_v47 }
0x10aa   :  { %3594 = vmatprep.subr.bf16.mxu1 %v4086_v4 }
0x10ab   :  { %v1996_v7 = vpop.permute.xlu1 %1995 }
0x10af   :  { %v2046_v19 = vpop.permute.xlu1 %2045 }
0x10b0   :  { %v3864_v10 = vpop.eup %3863  ;;  %v2051_v23 = vsel %vm462_vm1, %v2046_v19, 0 }
0x10b1   :  { %v1885_v14 = vsel %vm555_vm3, %v3864_v10, 0.0 }
0x10b2   :  { %v3866_v48 = vpop.eup %3865  ;;  %1886 = vadd.xlane.f32.xlu0 %v1885_v14 }
0x10b3   :  { %v1888_v21 = vsel %vm555_vm3, %v3866_v48, 0.0  ;;  %v2044_v27 = vpop.permute.xlu1 %2043 }
0x10b6   :  { %1889 = vadd.xlane.f32.xlu0 %v1888_v21 }
0x10cc   :  { %1897 = vrot.lane.b32.xlu0 %v4330_v20, %s4093_s29 }
0x10d0   :  { %1993 = vrot.lane.b32.xlu0 %v4321_v15, %s4077_s28  ;;  %v2001_v15 = vsel %vm462_vm1, %v1996_v7, 0  ;;  %v3727_v7 = vld [vmem:[#allocation10 + $0x20] sm:$0xff]  }
0x113f   :  { %v1887_v49 = vpop.xlane.xlu0 %1886 }
0x1140   :  { %3867 = vrcp.f32 %v1887_v49 }
0x1143   :  { %v1890_v53 = vpop.xlane.xlu0 %1889 }
0x1144   :  { %3869 = vrcp.f32 %v1890_v53 }
0x1147   :  { %v1898_v59 = vpop.permute.xlu0 %1897 }
0x1148   :  { %v1903_v0 = vsel %vm583_vm2, %v1898_v59, 0 }
0x1149   :  { %3577 = vmatpush3.bf16.msra.mxu0 %v1903_v0 }
0x114a   :  { %v3868_v6 = vpop.eup %3867  ;;  %3588 = vmatprep.subr.bf16.mxu0 %v4086_v4 }
0x114b   :  { %v1893_v8 = vmul.f32 %v3868_v6, %v3864_v10  ;;  %v1994_v26 = vpop.permute.xlu0 %1993  ;;  %v3726_v6 = vld [vmem:[#allocation10 + $0x18] sm:$0xff]  }
0x114d   :  { %v1895_v13 = vpack.c.bf16 %v1893_v8, %v1893_v8  ;;  %v3728_v8 = vld [vmem:[#allocation10 + $0x28] sm:$0xff]  }
0x114e   :  { %v3870_v16 = vpop.eup %3869 }
0x114f   :  { %v1894_v17 = vmul.f32 %v3870_v16, %v3866_v48  ;;  %3579 = vmatmul.mubr.msk.bf16.vlgmr.msra.gmra.mrb[48].mxu0 %vm555_vm3, %v1895_v13  ;;  %v3729_v13 = vld [vmem:[#allocation10 + $0x30] sm:$0xff]   ;;  %v3730_v16 = vld [vmem:[#allocation10 + $0x38] sm:$0xff]  }
0x1150   :  { %3590 = vmatprep.mubr.msk.bf16.mxu0 %vm4088_vm0, %v4086_v4 }
0x1151   :  { %v1896_v22 = vpack.c.bf16 %v1894_v17, %v1894_v17 }
0x1152   :  { %3589 = vmatpush3.bf16.xpose.msra.mxu0 %v2001_v15 }
0x1153   :  { %3585 = vmatmul.mubr.msk.bf16.vlgmr.msra.gmra.mrb[64].mxu1 %vm555_vm3, %v1896_v22  ;;  %3600 = vmatprep.subr.bf16.mxu0 %v4086_v4 }
0x1154   :  { %3595 = vmatpush3.bf16.xpose.msra.mxu1 %v2051_v23  ;;  %3596 = vmatprep.mubr.msk.bf16.mxu1 %vm4088_vm0, %v4086_v4 }
0x1155   :  { %3606 = vmatprep.subr.bf16.mxu1 %v4086_v4 }
0x1159   :  { %3591 = vmatmul.mubr.msk.bf16.vlgmr.msra.gmra.mrb[52].mxu0 %vm462_vm1, %v1994_v26 }
0x115a   :  { %3602 = vmatprep.mubr.msk.bf16.mxu0 %vm4088_vm0, %v4086_v4 }
0x115b   :  { %3597 = vmatmul.mubr.msk.bf16.vlgmr.msra.gmra.mrb[68].mxu1 %vm462_vm1, %v2044_v27 }
0x115c   :  { %3608 = vmatprep.mubr.msk.bf16.mxu1 %vm4088_vm0, %v4086_v4 }
0x1222   :  { %v1939_v28 = vpop.f32.mrb[48].mxu0 }
0x1223   :  { %v3580_v29 = vpop.f32.mrb[49].mxu0 }
0x1224   :  { %v1942_v31 = vpop.f32.mrb[50].mxu0 }
0x1225   :  { %v3581_v32 = vpop.f32.mrb[51].mxu0 }
0x1226   :  { %v1987_v33 = vpop.f32.mrb[64].mxu1 }
0x1227   :  { %v3681_v34 = vpack.i.bf16 %v1987_v33, %v1939_v28  ;;  %v3586_v35 = vpop.f32.mrb[65].mxu1 }
0x1228   :  { %v1990_v36 = vpop.f32.mrb[66].mxu1 }
0x1229   :  { %v3587_v37 = vpop.f32.mrb[67].mxu1 }
0x122c   :  { %v2037_v38 = vpop.f32.mrb[52].mxu0 }
0x122d   :  { %v3592_v39 = vpop.f32.mrb[53].mxu0  ;;  %v2093_v40 = vsel %vm555_vm3, %v2037_v38, -inf }
0x122e   :  { %2094 = vmax.xlane.f32.xlu0 %v2093_v40  ;;  %v2040_v41 = vpop.f32.mrb[54].mxu0  ;;  %v2087_v42 = vpop.f32.mrb[68].mxu1 }
0x122f   :  { %v3593_v43 = vpop.f32.mrb[55].mxu0  ;;  %v3598_v44 = vpop.f32.mrb[69].mxu1  ;;  %v2096_v45 = vsel %vm555_vm3, %v2087_v42, -inf }
0x1230   :  { %2097 = vmax.xlane.f32.xlu1 %v2096_v45  ;;  %v2090_v46 = vpop.f32.mrb[70].mxu1 }
0x1231   :  { %v3599_v47 = vpop.f32.mrb[71].mxu1 }
0x1241   :  { %2165 = vrot.lane.b32.xlu1 %v4357_v50, %s4077_s28 }
0x1245   :  { %3657 = vrot.lane.b32.xlu1 %v3656_v63, %s4077_s28 }
0x1249   :  { %3662 = vrot.lane.b32.xlu1 %v3661_v61, %s4093_s29 }
0x124d   :  { %3672 = vrot.lane.b32.xlu1 %v3671_v12, %s4083_s2 }
0x1251   :  { %3682 = vrot.lane.b32.xlu1 %v3681_v34, %s4090_s14 }
0x12bb   :  { %v2095_v10 = vpop.xlane.xlu0 %2094 }
0x12bc   :  { %v2099_v14 = vsub.f32 %v2037_v38, %v2095_v10 }
0x12bd   :  { %v2098_v50 = vpop.xlane.xlu1 %2097 }
0x12be   :  { %v2101_v48 = vmul.f32 1.442695, %v2099_v14  ;;  %v2100_v21 = vsub.f32 %v2087_v42, %v2098_v50 }
0x12c0   :  { %3871 = vpow2.f32 %v2101_v48  ;;  %v2103_v56 = vmul.f32 1.442695, %v2100_v21 }
0x12c1   :  { %v2166_v62 = vpop.permute.xlu1 %2165 }
0x12c2   :  { %3873 = vpow2.f32 %v2103_v56  ;;  %v2171_v63 = vsel %vm583_vm2, %v2166_v62, 0 }
0x12c3   :  { %3607 = vmatpush3.bf16.msra.mxu1 %v2171_v63 }
0x12c5   :  { %v3658_v31 = vpop.permute.xlu1 %3657 }
0x12c6   :  { %v3660_v34 = vunpack.i.h.bf16 %v3658_v31  ;;  %v3659_v35 = vunpack.i.l.bf16 %v3658_v31 }
0x12c8   :  { %v2270_v41 = vsel %vm462_vm1, %v4379_v11, %v3660_v34  ;;  %v2269_v42 = vsel %vm462_vm1, %v4377_v5, %v3659_v35  ;;  %v3745_v34 = vld [vmem:[#allocation11 + $0x44] ss:$16 sps:$4 sm:$0xff]   ;;  %v3748_v35 = vld [vmem:[#allocation11 + $0x4c] ss:$16 sps:$4 sm:$0xff]  }
0x12c9   :  { %v3663_v32 = vpop.permute.xlu1 %3662 }
0x12ca   :  { %v3872_v51 = vpop.eup %3871  ;;  %v3665_v36 = vunpack.i.h.bf16 %v3663_v32 }
0x12cb   :  { %v2105_v60 = vsel %vm555_vm3, %v3872_v51, 0.0 }
0x12cc   :  { %v3874_v61 = vpop.eup %3873  ;;  %2106 = vadd.xlane.f32.xlu0 %v2105_v60  ;;  %v2273_v44 = vsel %vm2271_vm4, %v2270_v41, %v3665_v36  ;;  %v3743_v36 = vld [vmem:[#allocation11 + $0x40] ss:$16 sps:$4 sm:$0xff]   ;;  %v3757_v41 = vld [vmem:[#allocation11 + $0x84] ss:$16 sps:$4 sm:$0xff]  }
0x12cd   :  { %v2108_v3 = vsel %vm555_vm3, %v3874_v61, 0.0  ;;  %v3673_v37 = vpop.permute.xlu1 %3672 }
0x12ce   :  { %v3675_v14 = vunpack.i.h.bf16 %v3673_v37  ;;  %v3674_v50 = vunpack.i.l.bf16 %v3673_v37  ;;  %v3751_v37 = vld [vmem:[#allocation11 + $0x64] ss:$16 sps:$4 sm:$0xff]  }
0x12d0   :  { %2109 = vadd.xlane.f32.xlu0 %v2108_v3 }
0x12d1   :  { %v3683_v48 = vpop.permute.xlu1 %3682 }
0x12d2   :  { %v3685_v11 = vunpack.i.h.bf16 %v3683_v48 }
0x12e6   :  { %2117 = vrot.lane.b32.xlu0 %v4330_v20, %s4077_s28 }
0x12ea   :  { %3667 = vrot.lane.b32.xlu0 %v3666_v2, %s4092_s26 }
0x12ee   :  { %3677 = vrot.lane.b32.xlu0 %v3676_v25, %s4091_s15  ;;  %v3725_v25 = vld [vmem:[#allocation10 + $0x10] sm:$0xff]  }
0x1359   :  { %v2107_v9 = vpop.xlane.xlu0 %2106 }
0x135a   :  { %3875 = vrcp.f32 %v2107_v9 }
0x135d   :  { %v2110_v12 = vpop.xlane.xlu0 %2109 }
0x135e   :  { %3877 = vrcp.f32 %v2110_v12 }
0x1361   :  { %v2118_v49 = vpop.permute.xlu0 %2117 }
0x1362   :  { %v2123_v53 = vsel %vm583_vm2, %v2118_v49, 0 }
0x1363   :  { %3601 = vmatpush3.bf16.msra.mxu0 %v2123_v53 }
0x1364   :  { %v3876_v59 = vpop.eup %3875  ;;  %3612 = vmatprep.subr.bf16.mxu0 %v4086_v4 }
0x1365   :  { %v2113_v20 = vmul.f32 %v3876_v59, %v3872_v51  ;;  %v3668_v33 = vpop.permute.xlu0 %3667  ;;  %v3684_v51 = vunpack.i.l.bf16 %v3683_v48  ;;  %v3767_v48 = vld [vmem:[#allocation11 + $0xc0] ss:$16 sps:$4 sm:$0xff]  }
0x1366   :  { %v3670_v38 = vunpack.i.h.bf16 %v3668_v33  ;;  %v3669_v39 = vunpack.i.l.bf16 %v3668_v33 }
0x1367   :  { %v2115_v0 = vpack.c.bf16 %v2113_v20, %v2113_v20  ;;  %v3200_v20 = vld [vmem:[%s4739_s6] ss:$0 sm:$0xff] }
0x1368   :  { %v3878_v52 = vpop.eup %3877  ;;  %v2276_v46 = vsel %vm2274_vm5, %v2273_v44, %v3670_v38  ;;  %v3754_v38 = vld [vmem:[#allocation11 + $0x6c] ss:$16 sps:$4 sm:$0xff]   ;;  %v3758_v44 = vld [vmem:[#allocation11 + $0x88] ss:$16 sps:$4 sm:$0xff]  }
0x1369   :  { %v2114_v1 = vmul.f32 %v3878_v52, %v3874_v61  ;;  %3603 = vmatmul.mubr.msk.bf16.vlgmr.msra.gmra.mrb[56].mxu0 %vm555_vm3, %v2115_v0  ;;  %v3678_v40 = vpop.permute.xlu0 %3677  ;;  %v2279_v56 = vsel %vm2277_vm6, %v2276_v46, %v3675_v14  ;;  %v3883_v0 = vld [vmem:[#allocation2] sm:$0xff]  ;;  %v3769_v14 = vld [vmem:[#allocation11 + $0xc4] ss:$16 sps:$4 sm:$0xff]  }
0x136a   :  { %3628 = vmatprep.mubr.msk.bf16.mxu0 %vm4088_vm0, %v4086_v4  ;;  %3613 = vmatpush3.bf16.msra.mxu0 %v3723_v18  ;;  %v3680_v47 = vunpack.i.h.bf16 %v3678_v40  ;;  %v3679_v10 = vunpack.i.l.bf16 %v3678_v40  ;;  %v3752_v40 = vld [vmem:[#allocation11 + $0x68] ss:$16 sps:$4 sm:$0xff]   ;;  %v3766_v46 = vld [vmem:[#allocation11 + $0xac] ss:$16 sps:$4 sm:$0xff]  }
0x136b   :  { %v2116_v2 = vpack.c.bf16 %v2114_v1, %v2114_v1  ;;  %3614 = vmatprep.subr.bf16.mxu0 %v4086_v4 }
0x136c   :  { %v2282_v63 = vsel %vm2280_vm7, %v2279_v56, %v3680_v47  ;;  %v3761_v47 = vld [vmem:[#allocation11 + $0xa0] ss:$16 sps:$4 sm:$0xff]   ;;  %v3775_v56 = vld [vmem:[#allocation11 + $0xe4] ss:$16 sps:$4 sm:$0xff]  }
0x136d   :  { %3609 = vmatmul.mubr.msk.bf16.vlgmr.msra.gmra.mrb[72].mxu1 %vm555_vm3, %v2116_v2  ;;  %v2285_v9 = vsel %vm2283_vm8, %v2282_v63, %v3685_v11  ;;  %v3773_v63 = vld [vmem:[#allocation11 + $0xe0] ss:$16 sps:$4 sm:$0xff]   ;;  %v3776_v11 = vld [vmem:[#allocation11 + $0xe8] ss:$16 sps:$4 sm:$0xff]  }
0x136e   :  { %2693 = vmatprep.mubr.bf16.mxu1 %v4087_v30  ;;  %3615 = vmatpush3.bf16.msra.mxu0 %v3724_v24  ;;  %v3884_v24 = vld [vmem:[#allocation2 + $0x8] sm:$0xff] }
0x136f   :  { %3616 = vmatprep.subr.bf16.mxu0 %v4086_v4 }
0x1372   :  { %3617 = vmatpush3.bf16.msra.mxu0 %v3725_v25 }
0x1373   :  { %3618 = vmatprep.subr.bf16.mxu0 %v4086_v4 }
0x1376   :  { %3619 = vmatpush3.bf16.msra.mxu0 %v3726_v6 }
0x1377   :  { %3620 = vmatprep.subr.bf16.mxu0 %v4086_v4 }
0x137a   :  { %3621 = vmatpush3.bf16.msra.mxu0 %v3727_v7 }
0x137b   :  { %3622 = vmatprep.subr.bf16.mxu0 %v4086_v4 }
0x137e   :  { %3623 = vmatpush3.bf16.msra.mxu0 %v3728_v8  ;;  %v3733_v8 = vld [vmem:[#allocation11 + $0x4] ss:$16 sps:$4 sm:$0xff]  }
0x137f   :  { %3624 = vmatprep.subr.bf16.mxu0 %v4086_v4  ;;  %2661 = vmatprep.subr.bf16.mxu1 %v3733_v8  ;;  %v3782_v8 = vld [vmem:[#allocation13 + $0x80] sm:$0xff]  }
0x1382   :  { %3625 = vmatpush3.bf16.msra.mxu0 %v3729_v13  ;;  %v3734_v13 = vld [vmem:[#allocation11 + $0x8] ss:$16 sps:$4 sm:$0xff]  }
0x1383   :  { %3626 = vmatprep.subr.bf16.mxu0 %v4086_v4  ;;  %v3664_v4 = vunpack.i.l.bf16 %v3663_v32 }
0x1385   :  { %v2272_v43 = vsel %vm2271_vm4, %v2269_v42, %v3664_v4  ;;  %v3746_v4 = vld [vmem:[#allocation11 + $0x48] ss:$16 sps:$4 sm:$0xff]   ;;  %v3760_v42 = vld [vmem:[#allocation11 + $0x8c] ss:$16 sps:$4 sm:$0xff]  }
0x1386   :  { %3627 = vmatpush3.bf16.msra.mxu0 %v3730_v16  ;;  %v2275_v45 = vsel %vm2274_vm5, %v2272_v43, %v3669_v39  ;;  %v3736_v16 = vld [vmem:[#allocation11 + $0xc] ss:$16 sps:$4 sm:$0xff]   ;;  %v3749_v39 = vld [vmem:[#allocation11 + $0x60] ss:$16 sps:$4 sm:$0xff]  }
0x1387   :  { %v2278_v21 = vsel %vm2277_vm6, %v2275_v45, %v3674_v50  ;;  %2704 = vmatprep.subr.bf16.mxu0 %v3736_v16  ;;  %v3755_v43 = vld [vmem:[#allocation11 + $0x80] ss:$16 sps:$4 sm:$0xff]   ;;  %v3763_v45 = vld [vmem:[#allocation11 + $0xa4] ss:$16 sps:$4 sm:$0xff]   ;;  %v3772_v50 = vld [vmem:[#allocation11 + $0xcc] ss:$16 sps:$4 sm:$0xff]  }
0x1388   :  { %v2281_v62 = vsel %vm2280_vm7, %v2278_v21, %v3679_v10  ;;  %v3764_v10 = vld [vmem:[#allocation11 + $0xa8] ss:$16 sps:$4 sm:$0xff]  }
0x1389   :  { %v2284_v3 = vsel %vm2283_vm8, %v2281_v62, %v3684_v51  ;;  %v3770_v21 = vld [vmem:[#allocation11 + $0xc8] ss:$16 sps:$4 sm:$0xff]   ;;  %v3778_v62 = vld [vmem:[#allocation11 + $0xec] ss:$16 sps:$4 sm:$0xff]   ;;  %v3779_v51 = vld [vmem:[#allocation13 + $0x40] sm:$0xff]  }
0x138a   :  { %v3783_v16 = vld [vmem:[#allocation13 + $0x48] sm:$0xff]  }
0x143c   :  { %v2159_v17 = vpop.f32.mrb[56].mxu0 }
0x143d   :  { %v3604_v19 = vpop.f32.mrb[57].mxu0 }
0x143e   :  { %v2162_v15 = vpop.f32.mrb[58].mxu0  ;;  %v3742_v19 = vld [vmem:[#allocation11 + $0x2c] ss:$16 sps:$4 sm:$0xff]  }
0x143f   :  { %v3605_v22 = vpop.f32.mrb[59].mxu0  ;;  %v3737_v15 = vld [vmem:[#allocation11 + $0x20] ss:$16 sps:$4 sm:$0xff]  }
0x1440   :  { %v2207_v23 = vpop.f32.mrb[72].mxu1  ;;  %v3740_v22 = vld [vmem:[#allocation11 + $0x28] ss:$16 sps:$4 sm:$0xff]  }
0x1441   :  { %v3686_v26 = vpack.i.bf16 %v2207_v23, %v2159_v17  ;;  %v3610_v27 = vpop.f32.mrb[73].mxu1  ;;  %v3739_v17 = vld [vmem:[#allocation11 + $0x24] ss:$16 sps:$4 sm:$0xff]  }
0x1442   :  { %v2210_v28 = vpop.f32.mrb[74].mxu1 }
0x1443   :  { %3687 = vrot.lane.b32.xlu0 %v3686_v26, %s4089_s4  ;;  %v3611_v29 = vpop.f32.mrb[75].mxu1 }
0x14b5   :  { %v3688_v5 = vpop.permute.xlu0 %3687 }
0x14b6   :  { %v3690_v60 = vunpack.i.h.bf16 %v3688_v5  ;;  %v3689_v61 = vunpack.i.l.bf16 %v3688_v5  ;;  %v3780_v5 = vld [vmem:[#allocation13 + $0xc0] sm:$0xff]  }
0x14b8   :  { %v2288_v12 = vsel %vm2286_vm9, %v2285_v9, %v3690_v60  ;;  %v2287_v49 = vsel %vm2286_vm9, %v2284_v3, %v3689_v61 }
0x14b9   :  { %v2289_v53 = vpack.c.bf16 %v2288_v12, %v2287_v49 }
0x14bb   :  { %3629 = vmatmul.mubr.bf16.vlgmr.msra.gmra.mrb[60].mxu0 %v2289_v53 }
0x14bc   :  { %2736 = vmatprep.mubr.bf16.mxu0 %v4087_v30  ;;  %v3731_v30 = vld [vmem:[#allocation11] ss:$16 sps:$4 sm:$0xff]   ;;  %2705 = vmatpush1.bf16.msra.mxu0 %v3734_v13 }
0x14bd   :  { %2662 = vmatpush1.bf16.msra.mxu1 %v3731_v30  ;;  %2706 = vmatprep.subr.bf16.mxu0 %v3742_v19  ;;  %v3781_v30 = vld [vmem:[#allocation13] sm:$0xff]   ;;  %v3785_v19 = vld [vmem:[#allocation13 + $0x8] sm:$0xff]  }
0x14be   :  { %2663 = vmatprep.subr.bf16.mxu1 %v3739_v17  ;;  %v3784_v17 = vld [vmem:[#allocation13 + $0xc8] sm:$0xff]  }
0x14c0   :  { %2707 = vmatpush1.bf16.msra.mxu0 %v3740_v22  ;;  %v3787_v22 = vld [vmem:[#allocation13 + $0x50] sm:$0xff]  }
0x14c1   :  { %2664 = vmatpush1.bf16.msra.mxu1 %v3737_v15  ;;  %2708 = vmatprep.subr.bf16.mxu0 %v3748_v35  ;;  %v3786_v15 = vld [vmem:[#allocation13 + $0x88] sm:$0xff]   ;;  %v3797_v35 = vld [vmem:[#allocation13 + $0x20] sm:$0xff]  }
0x14c2   :  { %2665 = vmatprep.subr.bf16.mxu1 %v3745_v34  ;;  %v3796_v34 = vld [vmem:[#allocation13 + $0xe0] sm:$0xff]  }
0x14c4   :  { %2709 = vmatpush1.bf16.msra.mxu0 %v3746_v4  ;;  %v3799_v4 = vld [vmem:[#allocation13 + $0x68] sm:$0xff]  }
0x14c5   :  { %2666 = vmatpush1.bf16.msra.mxu1 %v3743_v36  ;;  %2710 = vmatprep.subr.bf16.mxu0 %v3754_v38  ;;  %v3798_v36 = vld [vmem:[#allocation13 + $0xa0] sm:$0xff]   ;;  %v3801_v38 = vld [vmem:[#allocation13 + $0x28] sm:$0xff]  }
0x14c6   :  { %2667 = vmatprep.subr.bf16.mxu1 %v3751_v37  ;;  %v3800_v37 = vld [vmem:[#allocation13 + $0xe8] sm:$0xff]  }
0x14c8   :  { %2711 = vmatpush1.bf16.msra.mxu0 %v3752_v40  ;;  %v3803_v40 = vld [vmem:[#allocation13 + $0x70] sm:$0xff]  }
0x14c9   :  { %2668 = vmatpush1.bf16.msra.mxu1 %v3749_v39  ;;  %2712 = vmatprep.subr.bf16.mxu0 %v3760_v42  ;;  %v3802_v39 = vld [vmem:[#allocation13 + $0xa8] sm:$0xff]   ;;  %v3805_v42 = vld [vmem:[#allocation13 + $0x30] sm:$0xff]  }
0x14ca   :  { %2669 = vmatprep.subr.bf16.mxu1 %v3757_v41  ;;  %v3804_v41 = vld [vmem:[#allocation13 + $0xf0] sm:$0xff]  }
0x14cc   :  { %2713 = vmatpush1.bf16.msra.mxu0 %v3758_v44  ;;  %v3807_v44 = vld [vmem:[#allocation13 + $0x78] sm:$0xff]  }
0x14cd   :  { %2670 = vmatpush1.bf16.msra.mxu1 %v3755_v43  ;;  %2714 = vmatprep.subr.bf16.mxu0 %v3766_v46  ;;  %v3806_v43 = vld [vmem:[#allocation13 + $0xb0] sm:$0xff]   ;;  %v3809_v46 = vld [vmem:[#allocation13 + $0x38] sm:$0xff]  }
0x14ce   :  { %2671 = vmatprep.subr.bf16.mxu1 %v3763_v45  ;;  %v3808_v45 = vld [vmem:[#allocation13 + $0xf8] sm:$0xff]  }
0x14d0   :  { %2715 = vmatpush1.bf16.msra.mxu0 %v3764_v10  ;;  %v2479_v10 = vld [vmem:[%s4743_s10] sm:$0xf] }
0x14d1   :  { %2672 = vmatpush1.bf16.msra.mxu1 %v3761_v47  ;;  %2716 = vmatprep.subr.bf16.mxu0 %v3772_v50  ;;  %v3810_v47 = vld [vmem:[#allocation13 + $0xb8] sm:$0xff]   ;;  %v2484_v50 = vrot.slane %v2479_v10, %v217_v57 }
0x14d2   :  { %2673 = vmatprep.subr.bf16.mxu1 %v3769_v14  ;;  %v2495_v14 = vsub.s32 3, %v4298_v54 }
0x14d4   :  { %2717 = vmatpush1.bf16.msra.mxu0 %v3770_v21  ;;  %v2488_v21 = vrot.slane %v2479_v10, %v221_v55 }
0x14d5   :  { %2674 = vmatpush1.bf16.msra.mxu1 %v3767_v48  ;;  %2718 = vmatprep.subr.bf16.mxu0 %v3778_v62  ;;  %v2492_v48 = vrot.slane %v2479_v10, %v225_v58 }
0x14d6   :  { %2675 = vmatprep.subr.bf16.mxu1 %v3775_v56  ;;  %v2496_v56 = vrot.slane %v2479_v10, %v2495_v14 }
0x14d8   :  { %2719 = vmatpush1.bf16.msra.mxu0 %v3776_v11 }
0x14d9   :  { %2676 = vmatpush1.bf16.msra.mxu1 %v3773_v63  ;;  %3378 = vmatprep.subr.bf16.mxu0 %v3780_v5 }
0x14da   :  { %3356 = vmatprep.subr.bf16.mxu1 %v3779_v51 }
0x158e   :  { %v2388_v59 = vpop.f32.mrb[60].mxu0 }
0x158f   :  { %v2395_v52 = vadd.f32 %v3883_v0, %v2388_v59  ;;  %v3630_v1 = vpop.f32.mrb[61].mxu0 }
0x1590   :  { %v2391_v2 = vpop.f32.mrb[62].mxu0 }
0x1591   :  { %v4679_v18 = vadd.f32 %v3200_v20, %v2395_v52  ;;  %v2396_v25 = vadd.f32 %v3884_v24, %v2391_v2  ;;  %v3631_v6 = vpop.f32.mrb[63].mxu0  ;;  %v3202_v2 = vld [vmem:[%s4741_s8] ss:$0 sm:$0xff] }
0x1593   :  { %v4681_v7 = vadd.f32 %v3200_v20, %v2396_v25  ;;  %2408 = vadd.xlane.f32.xlu1 %v4679_v18  ;;  %v3201_v20 = vld [vmem:[%s4740_s7] ss:$0 sm:$0xff] }
0x1595   :  { %2410 = vadd.xlane.f32.xlu0 %v4681_v7 }
0x1620   :  { %v2409_v23 = vpop.xlane.xlu1 %2408 }
0x1621   :  { %v2412_v26 = vmul.f32 0.0078125, %v2409_v23  ;;  %v3788_v23 = vld [vmem:[#allocation13 + $0xd0] sm:$0xff]  }
0x1622   :  { %v2411_v27 = vpop.xlane.xlu0 %2410 }
0x1623   :  { %v4686_v28 = vsub.f32 %v4679_v18, %v2412_v26  ;;  %v2413_v29 = vmul.f32 0.0078125, %v2411_v27  ;;  %v3789_v26 = vld [vmem:[#allocation13 + $0x10] sm:$0xff]  }
0x1624   :  { %v3790_v27 = vld [vmem:[#allocation13 + $0x90] sm:$0xff]  }
0x1625   :  { %v4689_v31 = vsub.f32 %v4681_v7, %v2413_v29  ;;  %v2416_v32 = vmul.f32 %v4686_v28, %v4686_v28  ;;  %v3792_v29 = vld [vmem:[#allocation13 + $0xd8] sm:$0xff]  }
0x1627   :  { %2418 = vadd.xlane.f32.xlu0 %v2416_v32  ;;  %v2417_v33 = vmul.f32 %v4689_v31, %v4689_v31  ;;  %v3794_v32 = vld [vmem:[#allocation13 + $0x98] sm:$0xff]  }
0x162b   :  { %2420 = vadd.xlane.f32.xlu0 %v2417_v33  ;;  %v3795_v33 = vld [vmem:[#allocation13 + $0x60] sm:$0xff]  }
0x16b4   :  { %v2419_v60 = vpop.xlane.xlu0 %2418 }
0x16b5   :  { %v2422_v61 = vmul.f32 0.0078125, %v2419_v60 }
0x16b7   :  { %v2424_v3 = vadd.f32 1e-05, %v2422_v61 }
0x16b8   :  { %v2421_v9 = vpop.xlane.xlu0 %2420 }
0x16b9   :  { %3879 = vrsqrt.f32 %v2424_v3  ;;  %v2423_v12 = vmul.f32 0.0078125, %v2421_v9 }
0x16bb   :  { %v2425_v49 = vadd.f32 1e-05, %v2423_v12 }
0x16bd   :  { %3881 = vrsqrt.f32 %v2425_v49 }
0x16c3   :  { %v3880_v53 = vpop.eup %3879 }
0x16c4   :  { %v2428_v59 = vmul.f32 %v3880_v53, %v4686_v28  ;;  %v3791_v28 = vld [vmem:[#allocation13 + $0x58] sm:$0xff]  }
0x16c6   :  { %v2436_v1 = vmul.f32 %v3201_v20, %v2428_v59 }
0x16c7   :  { %v3882_v0 = vpop.eup %3881 }
0x16c8   :  { %v2429_v52 = vmul.f32 %v3882_v0, %v4689_v31  ;;  %v2444_v25 = vadd.f32 %v3202_v2, %v2436_v1  ;;  %v3793_v31 = vld [vmem:[#allocation13 + $0x18] sm:$0xff]  }
0x16ca   :  { %v2437_v24 = vmul.f32 %v3201_v20, %v2429_v52 }
0x16cc   :  { %v2445_v6 = vadd.f32 %v3202_v2, %v2437_v24 }
0x16ce   :  { %v2446_v13 = vpack.c.bf16 %v2445_v6, %v2444_v25 }
0x16d0   :  { %2694 = vmatmul.mubr.bf16.vlgmr.msra.gmra.mrb[76].mxu1 %v2446_v13  ;;  %2737 = vmatmul.mubr.bf16.vlgmr.msra.gmra.mrb[64].mxu0 %v2446_v13 }
0x16d1   :  { %3357 = vmatpush3.bf16.msra.mxu1 %v3781_v30  ;;  %3379 = vmatpush3.bf16.msra.mxu0 %v3782_v8 }
0x16d2   :  { %3358 = vmatprep.subr.bf16.mxu1 %v3783_v16  ;;  %3380 = vmatprep.subr.bf16.mxu0 %v3784_v17 }
0x16d5   :  { %3359 = vmatpush3.bf16.msra.mxu1 %v3785_v19  ;;  %3381 = vmatpush3.bf16.msra.mxu0 %v3786_v15  ;;  %v3235_v19 = vld [vmem:[%s4745_s12] ss:$0 sm:$0xff]  ;;  %s4039_s12 = scalar_lea.vmem %s3114_s1, 256 }
0x16d6   :  { %3360 = vmatprep.subr.bf16.mxu1 %v3787_v22  ;;  %3382 = vmatprep.subr.bf16.mxu0 %v3788_v23  ;;  %p4040_p0 = scmp.ne.s32.totalorder %s3114_s1, %s4039_s12  ;;  %p4045_p2 = scmp.lt.s32.totalorder %s4039_s12, %s4039_s12 }
0x16d8   :  { %p4046_p3 = por %p4045_p2, %p4044_p1 }
0x16d9   :  { %3361 = vmatpush3.bf16.msra.mxu1 %v3789_v26  ;;  %3383 = vmatpush3.bf16.msra.mxu0 %v3790_v27 }
0x16da   :  { %3362 = vmatprep.subr.bf16.mxu1 %v3791_v28  ;;  %3384 = vmatprep.subr.bf16.mxu0 %v3792_v29  ;;  %p4047_p4 = pnand %p4046_p3, %p4040_p0 }
0x16dd   :  { %3363 = vmatpush3.bf16.msra.mxu1 %v3793_v31  ;;  %3385 = vmatpush3.bf16.msra.mxu0 %v3794_v32 }
0x16de   :  { %3364 = vmatprep.subr.bf16.mxu1 %v3795_v33  ;;  %3386 = vmatprep.subr.bf16.mxu0 %v3796_v34 }
0x16e1   :  { %3365 = vmatpush3.bf16.msra.mxu1 %v3797_v35  ;;  %3387 = vmatpush3.bf16.msra.mxu0 %v3798_v36 }
0x16e2   :  { %3366 = vmatprep.subr.bf16.mxu1 %v3799_v4  ;;  %3388 = vmatprep.subr.bf16.mxu0 %v3800_v37 }
0x16e5   :  { %3367 = vmatpush3.bf16.msra.mxu1 %v3801_v38  ;;  %3389 = vmatpush3.bf16.msra.mxu0 %v3802_v39 }
0x16e6   :  { %3368 = vmatprep.subr.bf16.mxu1 %v3803_v40  ;;  %3390 = vmatprep.subr.bf16.mxu0 %v3804_v41 }
0x16e9   :  { %3369 = vmatpush3.bf16.msra.mxu1 %v3805_v42  ;;  %3391 = vmatpush3.bf16.msra.mxu0 %v3806_v43 }
0x16ea   :  { %3370 = vmatprep.subr.bf16.mxu1 %v3807_v44  ;;  %3392 = vmatprep.subr.bf16.mxu0 %v3808_v45 }
0x16ed   :  { %3371 = vmatpush3.bf16.msra.mxu1 %v3809_v46  ;;  %3393 = vmatpush3.bf16.msra.mxu0 %v3810_v47 }
0x17a3   :  { %v2695_v62 = vpop.f32.mrb[76].mxu1  ;;  %v2738_v63 = vpop.f32.mrb[64].mxu0 }
0x17a4   :  { %v2696_v11 = vadd.f32 %v2695_v62, %v2484_v50  ;;  %v2739_v51 = vadd.f32 %v2738_v63, %v2492_v48  ;;  %v2697_v5 = vpop.f32.mrb[77].mxu1  ;;  %v2740_v60 = vpop.f32.mrb[65].mxu0 }
0x17a5   :  { %v2698_v61 = vadd.f32 %v2697_v5, %v2488_v21  ;;  %v2741_v3 = vadd.f32 %v2740_v60, %v2496_v56  ;;  %v2699_v9 = vpop.f32.mrb[78].mxu1  ;;  %v2742_v12 = vpop.f32.mrb[66].mxu0 }
0x17a6   :  { %v2700_v49 = vadd.f32 %v2699_v9, %v2484_v50  ;;  %v2743_v53 = vadd.f32 %v2742_v12, %v2492_v48  ;;  %v2701_v57 = vpop.f32.mrb[79].mxu1  ;;  %v2744_v59 = vpop.f32.mrb[67].mxu0  ;;  %v2747_v0 = vmax.f32 %v2696_v11, 0.0  ;;  %v2749_v54 = vmax.f32 %v2739_v51, 0.0 }
0x17a7   :  { %v2702_v20 = vadd.f32 %v2701_v57, %v2488_v21  ;;  %v2745_v58 = vadd.f32 %v2744_v59, %v2496_v56  ;;  %v2748_v1 = vmax.f32 %v2698_v61, 0.0  ;;  %v2750_v2 = vmax.f32 %v2741_v3, 0.0 }
0x17a8   :  { %v2751_v55 = vmax.f32 %v2700_v49, 0.0  ;;  %v2753_v52 = vmax.f32 %v2743_v53, 0.0 }
0x17a9   :  { %v2752_v24 = vmax.f32 %v2702_v20, 0.0  ;;  %v2754_v25 = vmax.f32 %v2745_v58, 0.0 }
0x17aa   :  { %v2755_v6 = vpack.c.bf16 %v2751_v55, %v2747_v0  ;;  %v2757_v30 = vpack.c.bf16 %v2753_v52, %v2749_v54 }
0x17ab   :  { %v2756_v8 = vpack.c.bf16 %v2752_v24, %v2748_v1  ;;  %v2758_v13 = vpack.c.bf16 %v2754_v25, %v2750_v2 }
0x17ad   :  { %3054 = vmatprep.mubr.bf16.mxu1 %v2756_v8  ;;  %3095 = vmatprep.mubr.bf16.mxu0 %v2758_v13 }
0x17ae   :  { %3055 = vmatmul.mubr.bf16.vlgmr.msra.gmra.mrb[80].mxu1 %v2755_v6  ;;  %3096 = vmatmul.mubr.bf16.vlgmr.msra.gmra.mrb[68].mxu0 %v2757_v30 }
0x1881   :  { %v3372_v16 = vpop.f32.mrb[80].mxu1  ;;  %v3394_v17 = vpop.f32.mrb[68].mxu0 }
0x1882   :  { %v3373_v15 = vpop.f32.mrb[81].mxu1  ;;  %v3395_v22 = vpop.f32.mrb[69].mxu0 }
0x1883   :  { %v3374_v23 = vadd.f32 %v3373_v15, %v3372_v16  ;;  %v3396_v26 = vadd.f32 %v3395_v22, %v3394_v17  ;;  %v3375_v27 = vpop.f32.mrb[82].mxu1  ;;  %v3397_v28 = vpop.f32.mrb[70].mxu0 }
0x1884   :  { %v3376_v29 = vpop.f32.mrb[83].mxu1  ;;  %v3398_v31 = vpop.f32.mrb[71].mxu0 }
0x1885   :  { %v3057_v32 = vadd.f32 %v3374_v23, %v3235_v19  ;;  %v3377_v33 = vadd.f32 %v3376_v29, %v3375_v27  ;;  %v3399_v34 = vadd.f32 %v3398_v31, %v3397_v28 }
0x1887   :  { %v3098_v35 = vadd.f32 %v3396_v26, %v3057_v32  ;;  %v3060_v36 = vadd.f32 %v3377_v33, %v3235_v19 }
0x1889   :  { %v3104_v4 = vadd.f32 %v3098_v35, %v4679_v18  ;;  %v3101_v37 = vadd.f32 %v3399_v34, %v3060_v36 }
0x188b   :  { %3106 = vst [vmem:[#allocation14] sm:$0xff] %v3104_v4  ;;  %v3105_v38 = vadd.f32 %v3101_v37, %v4681_v7 }
0x188d   :  { %3107 = vst [vmem:[#allocation14 + $0x8] sm:$0xff] %v3105_v38 }
0x188e   :  { %4050 = shalt.err (!%p4047_p4)
}
0x188f   :  { %s4051_s23 = scalar_lea.hbm %s4746_s13, 256 }
0x1890   :  { %p4052_p5 = scmp.ne.s32.totalorder %s4746_s13, %s4051_s23  ;;  %p4055_p6 = scmp.lt.u32.totalorder %s4051_s23, %s4746_s13 }
0x1892   :  { %p4057_p7 = pnand %p4055_p6, %p4052_p5 }
0x1894   :  { %4060 = shalt.err (!%p4057_p7)
}
0x1895   :  { %3119 = dma.vmem_to_hbm [thread:$0]  %s3114_s1, 256, %s4746_s13, [#allocation4], %s4079_s9, %s4079_s9, %s4080_s19  }
0x1896   :  { %4069 = dma.done.wait [#allocation4], 256  }
0x1897   :  { %4070 = vsyncadd [#allocation4], 4294967040 }
0x1898   :  { %3123 = vsyncpa [#allocation3], 1 }
0x1899   :  { %3124 = vsyncpa [#allocation6], 1 }
0x189a   :  { %3125 = vsyncpa [#allocation9], 1 }
0x189b   :  { %3126 = vsyncpa [#allocation12], 1 }
0x189c   :  { %3127 = vsyncpa [#allocation4], 1 }

</bundles_post_ra>
